<compile_context>
chip_gen: v6e
topology: v6e:2x2x1
jax: 0.10.0
libtpu: 0.0.40
codegen_flags: <defaults>
</compile_context>

<pallas_src>
import math
import functools

import jax
import jax.numpy as jnp
from jax import lax
from jax.experimental import pallas as pl
from jax.experimental.pallas import tpu as pltpu


def _round_up(x, m):
    return ((x + m - 1) // m) * m


# ----------------------------------------------------------------------------
# Kernel
# ----------------------------------------------------------------------------

def _embedding_gather_kernel(tok_ref, table_hbm, o_ref, sem,
                             *, tb, chunk, ring, scale):
    """Gather `tb` embedding rows for one token block, scale, store.

    tok_ref   : SMEM [n_padded] int32      (scalar-prefetched token ids, ALL blocks)
    table_hbm : HBM  [vocab, d_model]      (memory_space=pl.ANY, never copied wholesale)
    o_ref     : VMEM [tb, d_model]         output block (DMA gather lands here directly)
    sem       : DMA semaphores [ring, chunk]  (ring of in-flight row copies)
    """
    b = pl.program_id(0)
    base = b * tb                        # first token of this block inside tok_ref
    n_chunks = tb // chunk               # static
    max_id_idx = tok_ref.shape[0] - 1    # static, for clamped speculative id reads

    def start_chunk(row0, slot, ids):
        # ids: python list of `chunk` token-id scalars already read from SMEM.
        for r in range(chunk):
            pltpu.make_async_copy(
                table_hbm.at[pl.ds(ids[r], 1), :],   # [1, d_model] row from HBM
                o_ref.at[pl.ds(row0 + r, 1), :],     # straight into the output block
                sem.at[slot, r],
            ).start()

    def wait_chunk(row0, slot):
        for r in range(chunk):
            pltpu.make_async_copy(
                table_hbm.at[pl.ds(0, 1), :],        # shape-only: matches issued copy
                o_ref.at[pl.ds(row0 + r, 1), :],
                sem.at[slot, r],
            ).wait()

    # ---- Prologue: fill the DMA ring (<= ring chunks, statically unrolled) ----
    for c in range(min(ring, n_chunks)):
        row0 = c * chunk
        ids = [tok_ref[base + row0 + r] for r in range(chunk)]
        start_chunk(row0, c % ring, ids)

    # ---- Steady state: wait chunk c, refill its slot with chunk c+ring, ----
    # ---- then scale the completed (chunk, d_model) slab in place.        ----
    def body(c, carry):
        slot = c % ring
        nxt = c + ring
        # Hoist next chunk's SMEM id reads ahead of the DMA waits.
        nxt_ids = [tok_ref[jnp.minimum(base + nxt * chunk + r, max_id_idx)]
                   for r in range(chunk)]

        row0 = pl.multiple_of(c * chunk, chunk)
        wait_chunk(row0, slot)

        @pl.when(nxt < n_chunks)
        def _():
            nxt_row0 = pl.multiple_of(nxt * chunk, chunk)
            start_chunk(nxt_row0, slot, nxt_ids)

        # Fused epilogue on the completed chunk: * sqrt(d_model), in place.
        o_ref[pl.ds(row0, chunk), :] = o_ref[pl.ds(row0, chunk), :] * scale
        return carry

    lax.fori_loop(0, n_chunks, body, 0)


# ----------------------------------------------------------------------------
# Wrapper
# ----------------------------------------------------------------------------

def embeddings_forward(tokens, table, *, token_block=256, chunk=8, max_ring=4):
    """Pallas equivalent of Embeddings.forward: lut(x) * sqrt(d_model).

    tokens: int array of any shape (e.g. [batch, seq])
    table : [vocab, d_model] float embedding table
    returns: tokens.shape + (d_model,), same dtype as `table`
    """
    vocab, d_model = table.shape
    orig_shape = tokens.shape
    flat = tokens.reshape(-1).astype(jnp.int32)
    n_tokens = int(flat.shape[0])
    if n_tokens == 0:
        return jnp.zeros((*orig_shape, d_model), table.dtype)

    # Token-block size: multiple of 8 (f32 sublane tile), capped so the
    # double-buffered output block stays a few hundred KiB of VMEM.
    tb = min(_round_up(token_block, chunk), _round_up(n_tokens, chunk))
    n_padded = _round_up(n_tokens, tb)
    if n_padded != n_tokens:
        flat = jnp.pad(flat, (0, n_padded - n_tokens))   # pad with valid token id 0
    n_blocks = n_padded // tb
    ring = min(max_ring, tb // chunk)    # chunks of row-DMAs kept in flight

    kernel = functools.partial(
        _embedding_gather_kernel,
        tb=tb, chunk=chunk, ring=ring, scale=math.sqrt(d_model),
    )

    out = pl.pallas_call(
        kernel,
        grid_spec=pltpu.PrefetchScalarGridSpec(
            num_scalar_prefetch=1,                   # token ids -> SMEM
            grid=(n_blocks,),                        # one step per token block
            in_specs=[
                pl.BlockSpec(memory_space=pl.ANY),   # table stays in HBM; manual DMA gather
            ],
            out_specs=pl.BlockSpec((tb, d_model), lambda b, tok: (b, 0)),
            scratch_shapes=[
                pltpu.SemaphoreType.DMA((ring, chunk)),
            ],
        ),
        out_shape=jax.ShapeDtypeStruct((n_padded, d_model), table.dtype),
        compiler_params=pltpu.CompilerParams(
            # Token blocks are independent -> megacore sharding on v7x.
            dimension_semantics=("parallel",),
        ),
    )(flat, table)

    return out[:n_tokens].reshape(*orig_shape, d_model)


# ----------------------------------------------------------------------------
# Main
# ----------------------------------------------------------------------------

if __name__ == "__main__":
    vocab, d_model = 1000, 512          # d_model = 512 as in the module spec

    key = jax.random.PRNGKey(0)
    k_tab, k_tok1, k_tok2 = jax.random.split(key, 3)
    table = jax.random.normal(k_tab, (vocab, d_model), jnp.float32)

    # Small case matching the module spec (batch=2, seq=8 -> 16 tokens, 1 block).
    tokens = jax.random.randint(k_tok1, (2, 8), 0, vocab, dtype=jnp.int32)
    out = jax.block_until_ready(embeddings_forward(tokens, table))
    ref = jnp.take(table, tokens, axis=0) * math.sqrt(d_model)
    assert out.shape == (2, 8, d_model) and out.dtype == jnp.float32
    assert bool(jnp.all(jnp.isfinite(out)))
    assert bool(jnp.allclose(out, ref, rtol=1e-6, atol=1e-5))

    # Multi-block + padding case (300 tokens -> two 256-row blocks, 212 pad rows).
    tokens2 = jax.random.randint(k_tok2, (2, 150), 0, vocab, dtype=jnp.int32)
    out2 = jax.block_until_ready(embeddings_forward(tokens2, table))
    ref2 = jnp.take(table, tokens2, axis=0) * math.sqrt(d_model)
    assert out2.shape == (2, 150, d_model)
    assert bool(jnp.allclose(out2, ref2, rtol=1e-6, atol=1e-5))

    print("KERNEL_OK")
</pallas_src>

<mosaic_0001>
module attributes {stable_mosaic.version = 11 : i64} {
  func.func @_embedding_gather_kernel(%arg0: i32, %arg1: memref<16xi32, #tpu.memory_space<smem>>, %arg2: memref<1000x512xf32, #tpu.memory_space<any>>, %arg3: memref<16x512xf32, #tpu.memory_space<vmem>>, %arg4: memref<2x8x!tpu.dma_semaphore, #tpu.memory_space<semaphore_mem>>) attributes {dimension_semantics = [#tpu.dimension_semantics<parallel>], iteration_bounds = array<i64: 1>, scalar_prefetch = 1 : i64, scratch_operands = 1 : i64, tpu.core_type = #tpu.core_type<tc>, window_params = [{}, {transform_indices = @transform_1, window_bounds = array<i64: 16, 512>}]} {
    %c16_i32 = arith.constant 16 : i32
    %0 = arith.muli %arg0, %c16_i32 : i32
    %c0_i32 = arith.constant 0 : i32
    %1 = arith.addi %0, %c0_i32 : i32
    %c0_i32_0 = arith.constant 0 : i32
    %2 = arith.addi %1, %c0_i32_0 : i32
    %3 = arith.index_cast %2 : i32 to index
    %4 = memref.load %arg1[%3] : memref<16xi32, #tpu.memory_space<smem>>
    %c0_i32_1 = arith.constant 0 : i32
    %5 = arith.addi %0, %c0_i32_1 : i32
    %c1_i32 = arith.constant 1 : i32
    %6 = arith.addi %5, %c1_i32 : i32
    %7 = arith.index_cast %6 : i32 to index
    %8 = memref.load %arg1[%7] : memref<16xi32, #tpu.memory_space<smem>>
    %c0_i32_2 = arith.constant 0 : i32
    %9 = arith.addi %0, %c0_i32_2 : i32
    %c2_i32 = arith.constant 2 : i32
    %10 = arith.addi %9, %c2_i32 : i32
    %11 = arith.index_cast %10 : i32 to index
    %12 = memref.load %arg1[%11] : memref<16xi32, #tpu.memory_space<smem>>
    %c0_i32_3 = arith.constant 0 : i32
    %13 = arith.addi %0, %c0_i32_3 : i32
    %c3_i32 = arith.constant 3 : i32
    %14 = arith.addi %13, %c3_i32 : i32
    %15 = arith.index_cast %14 : i32 to index
    %16 = memref.load %arg1[%15] : memref<16xi32, #tpu.memory_space<smem>>
    %c0_i32_4 = arith.constant 0 : i32
    %17 = arith.addi %0, %c0_i32_4 : i32
    %c4_i32 = arith.constant 4 : i32
    %18 = arith.addi %17, %c4_i32 : i32
    %19 = arith.index_cast %18 : i32 to index
    %20 = memref.load %arg1[%19] : memref<16xi32, #tpu.memory_space<smem>>
    %c0_i32_5 = arith.constant 0 : i32
    %21 = arith.addi %0, %c0_i32_5 : i32
    %c5_i32 = arith.constant 5 : i32
    %22 = arith.addi %21, %c5_i32 : i32
    %23 = arith.index_cast %22 : i32 to index
    %24 = memref.load %arg1[%23] : memref<16xi32, #tpu.memory_space<smem>>
    %c0_i32_6 = arith.constant 0 : i32
    %25 = arith.addi %0, %c0_i32_6 : i32
    %c6_i32 = arith.constant 6 : i32
    %26 = arith.addi %25, %c6_i32 : i32
    %27 = arith.index_cast %26 : i32 to index
    %28 = memref.load %arg1[%27] : memref<16xi32, #tpu.memory_space<smem>>
    %c0_i32_7 = arith.constant 0 : i32
    %29 = arith.addi %0, %c0_i32_7 : i32
    %c7_i32 = arith.constant 7 : i32
    %30 = arith.addi %29, %c7_i32 : i32
    %31 = arith.index_cast %30 : i32 to index
    %32 = memref.load %arg1[%31] : memref<16xi32, #tpu.memory_space<smem>>
    %c0_i32_8 = arith.constant 0 : i32
    %c0_i32_9 = arith.constant 0 : i32
    %c0_i32_10 = arith.constant 0 : i32
    %33 = tpu.memref_slice %arg2[%4, %c0_i32_10] : memref<1000x512xf32, #tpu.memory_space<any>> -> memref<1x512xf32, #tpu.memory_space<any>>
    %c0_i32_11 = arith.constant 0 : i32
    %c0_i32_12 = arith.constant 0 : i32
    %34 = tpu.memref_slice %arg3[%c0_i32_11, %c0_i32_12] : memref<16x512xf32, #tpu.memory_space<vmem>> -> memref<1x512xf32, #tpu.memory_space<vmem>>
    %35 = tpu.memref_slice %arg4[%c0_i32_8, %c0_i32_9] : memref<2x8x!tpu.dma_semaphore, #tpu.memory_space<semaphore_mem>> -> memref<1x1x!tpu.dma_semaphore, #tpu.memory_space<semaphore_mem>>
    %36 = tpu.memref_squeeze %35 : memref<1x1x!tpu.dma_semaphore, #tpu.memory_space<semaphore_mem>> -> memref<!tpu.dma_semaphore, #tpu.memory_space<semaphore_mem>>
    tpu.enqueue_dma source(%33 : memref<1x512xf32, #tpu.memory_space<any>>) target(%34 : memref<1x512xf32, #tpu.memory_space<vmem>>) target_semaphore(%36 : memref<!tpu.dma_semaphore, #tpu.memory_space<semaphore_mem>>)
    %c0_i32_13 = arith.constant 0 : i32
    %c1_i32_14 = arith.constant 1 : i32
    %c0_i32_15 = arith.constant 0 : i32
    %37 = tpu.memref_slice %arg2[%8, %c0_i32_15] : memref<1000x512xf32, #tpu.memory_space<any>> -> memref<1x512xf32, #tpu.memory_space<any>>
    %c1_i32_16 = arith.constant 1 : i32
    %c0_i32_17 = arith.constant 0 : i32
    %38 = tpu.memref_slice %arg3[%c1_i32_16, %c0_i32_17] : memref<16x512xf32, #tpu.memory_space<vmem>> -> memref<1x512xf32, #tpu.memory_space<vmem>>
    %39 = tpu.memref_slice %arg4[%c0_i32_13, %c1_i32_14] : memref<2x8x!tpu.dma_semaphore, #tpu.memory_space<semaphore_mem>> -> memref<1x1x!tpu.dma_semaphore, #tpu.memory_space<semaphore_mem>>
    %40 = tpu.memref_squeeze %39 : memref<1x1x!tpu.dma_semaphore, #tpu.memory_space<semaphore_mem>> -> memref<!tpu.dma_semaphore, #tpu.memory_space<semaphore_mem>>
    tpu.enqueue_dma source(%37 : memref<1x512xf32, #tpu.memory_space<any>>) target(%38 : memref<1x512xf32, #tpu.memory_space<vmem>>) target_semaphore(%40 : memref<!tpu.dma_semaphore, #tpu.memory_space<semaphore_mem>>)
    %c0_i32_18 = arith.constant 0 : i32
    %c2_i32_19 = arith.constant 2 : i32
    %c0_i32_20 = arith.constant 0 : i32
    %41 = tpu.memref_slice %arg2[%12, %c0_i32_20] : memref<1000x512xf32, #tpu.memory_space<any>> -> memref<1x512xf32, #tpu.memory_space<any>>
    %c2_i32_21 = arith.constant 2 : i32
    %c0_i32_22 = arith.constant 0 : i32
    %42 = tpu.memref_slice %arg3[%c2_i32_21, %c0_i32_22] : memref<16x512xf32, #tpu.memory_space<vmem>> -> memref<1x512xf32, #tpu.memory_space<vmem>>
    %43 = tpu.memref_slice %arg4[%c0_i32_18, %c2_i32_19] : memref<2x8x!tpu.dma_semaphore, #tpu.memory_space<semaphore_mem>> -> memref<1x1x!tpu.dma_semaphore, #tpu.memory_space<semaphore_mem>>
    %44 = tpu.memref_squeeze %43 : memref<1x1x!tpu.dma_semaphore, #tpu.memory_space<semaphore_mem>> -> memref<!tpu.dma_semaphore, #tpu.memory_space<semaphore_mem>>
    tpu.enqueue_dma source(%41 : memref<1x512xf32, #tpu.memory_space<any>>) target(%42 : memref<1x512xf32, #tpu.memory_space<vmem>>) target_semaphore(%44 : memref<!tpu.dma_semaphore, #tpu.memory_space<semaphore_mem>>)
    %c0_i32_23 = arith.constant 0 : i32
    %c3_i32_24 = arith.constant 3 : i32
    %c0_i32_25 = arith.constant 0 : i32
    %45 = tpu.memref_slice %arg2[%16, %c0_i32_25] : memref<1000x512xf32, #tpu.memory_space<any>> -> memref<1x512xf32, #tpu.memory_space<any>>
    %c3_i32_26 = arith.constant 3 : i32
    %c0_i32_27 = arith.constant 0 : i32
    %46 = tpu.memref_slice %arg3[%c3_i32_26, %c0_i32_27] : memref<16x512xf32, #tpu.memory_space<vmem>> -> memref<1x512xf32, #tpu.memory_space<vmem>>
    %47 = tpu.memref_slice %arg4[%c0_i32_23, %c3_i32_24] : memref<2x8x!tpu.dma_semaphore, #tpu.memory_space<semaphore_mem>> -> memref<1x1x!tpu.dma_semaphore, #tpu.memory_space<semaphore_mem>>
    %48 = tpu.memref_squeeze %47 : memref<1x1x!tpu.dma_semaphore, #tpu.memory_space<semaphore_mem>> -> memref<!tpu.dma_semaphore, #tpu.memory_space<semaphore_mem>>
    tpu.enqueue_dma source(%45 : memref<1x512xf32, #tpu.memory_space<any>>) target(%46 : memref<1x512xf32, #tpu.memory_space<vmem>>) target_semaphore(%48 : memref<!tpu.dma_semaphore, #tpu.memory_space<semaphore_mem>>)
    %c0_i32_28 = arith.constant 0 : i32
    %c4_i32_29 = arith.constant 4 : i32
    %c0_i32_30 = arith.constant 0 : i32
    %49 = tpu.memref_slice %arg2[%20, %c0_i32_30] : memref<1000x512xf32, #tpu.memory_space<any>> -> memref<1x512xf32, #tpu.memory_space<any>>
    %c4_i32_31 = arith.constant 4 : i32
    %c0_i32_32 = arith.constant 0 : i32
    %50 = tpu.memref_slice %arg3[%c4_i32_31, %c0_i32_32] : memref<16x512xf32, #tpu.memory_space<vmem>> -> memref<1x512xf32, #tpu.memory_space<vmem>>
    %51 = tpu.memref_slice %arg4[%c0_i32_28, %c4_i32_29] : memref<2x8x!tpu.dma_semaphore, #tpu.memory_space<semaphore_mem>> -> memref<1x1x!tpu.dma_semaphore, #tpu.memory_space<semaphore_mem>>
    %52 = tpu.memref_squeeze %51 : memref<1x1x!tpu.dma_semaphore, #tpu.memory_space<semaphore_mem>> -> memref<!tpu.dma_semaphore, #tpu.memory_space<semaphore_mem>>
    tpu.enqueue_dma source(%49 : memref<1x512xf32, #tpu.memory_space<any>>) target(%50 : memref<1x512xf32, #tpu.memory_space<vmem>>) target_semaphore(%52 : memref<!tpu.dma_semaphore, #tpu.memory_space<semaphore_mem>>)
    %c0_i32_33 = arith.constant 0 : i32
    %c5_i32_34 = arith.constant 5 : i32
    %c0_i32_35 = arith.constant 0 : i32
    %53 = tpu.memref_slice %arg2[%24, %c0_i32_35] : memref<1000x512xf32, #tpu.memory_space<any>> -> memref<1x512xf32, #tpu.memory_space<any>>
    %c5_i32_36 = arith.constant 5 : i32
    %c0_i32_37 = arith.constant 0 : i32
    %54 = tpu.memref_slice %arg3[%c5_i32_36, %c0_i32_37] : memref<16x512xf32, #tpu.memory_space<vmem>> -> memref<1x512xf32, #tpu.memory_space<vmem>>
    %55 = tpu.memref_slice %arg4[%c0_i32_33, %c5_i32_34] : memref<2x8x!tpu.dma_semaphore, #tpu.memory_space<semaphore_mem>> -> memref<1x1x!tpu.dma_semaphore, #tpu.memory_space<semaphore_mem>>
    %56 = tpu.memref_squeeze %55 : memref<1x1x!tpu.dma_semaphore, #tpu.memory_space<semaphore_mem>> -> memref<!tpu.dma_semaphore, #tpu.memory_space<semaphore_mem>>
    tpu.enqueue_dma source(%53 : memref<1x512xf32, #tpu.memory_space<any>>) target(%54 : memref<1x512xf32, #tpu.memory_space<vmem>>) target_semaphore(%56 : memref<!tpu.dma_semaphore, #tpu.memory_space<semaphore_mem>>)
    %c0_i32_38 = arith.constant 0 : i32
    %c6_i32_39 = arith.constant 6 : i32
    %c0_i32_40 = arith.constant 0 : i32
    %57 = tpu.memref_slice %arg2[%28, %c0_i32_40] : memref<1000x512xf32, #tpu.memory_space<any>> -> memref<1x512xf32, #tpu.memory_space<any>>
    %c6_i32_41 = arith.constant 6 : i32
    %c0_i32_42 = arith.constant 0 : i32
    %58 = tpu.memref_slice %arg3[%c6_i32_41, %c0_i32_42] : memref<16x512xf32, #tpu.memory_space<vmem>> -> memref<1x512xf32, #tpu.memory_space<vmem>>
    %59 = tpu.memref_slice %arg4[%c0_i32_38, %c6_i32_39] : memref<2x8x!tpu.dma_semaphore, #tpu.memory_space<semaphore_mem>> -> memref<1x1x!tpu.dma_semaphore, #tpu.memory_space<semaphore_mem>>
    %60 = tpu.memref_squeeze %59 : memref<1x1x!tpu.dma_semaphore, #tpu.memory_space<semaphore_mem>> -> memref<!tpu.dma_semaphore, #tpu.memory_space<semaphore_mem>>
    tpu.enqueue_dma source(%57 : memref<1x512xf32, #tpu.memory_space<any>>) target(%58 : memref<1x512xf32, #tpu.memory_space<vmem>>) target_semaphore(%60 : memref<!tpu.dma_semaphore, #tpu.memory_space<semaphore_mem>>)
    %c0_i32_43 = arith.constant 0 : i32
    %c7_i32_44 = arith.constant 7 : i32
    %c0_i32_45 = arith.constant 0 : i32
    %61 = tpu.memref_slice %arg2[%32, %c0_i32_45] : memref<1000x512xf32, #tpu.memory_space<any>> -> memref<1x512xf32, #tpu.memory_space<any>>
    %c7_i32_46 = arith.constant 7 : i32
    %c0_i32_47 = arith.constant 0 : i32
    %62 = tpu.memref_slice %arg3[%c7_i32_46, %c0_i32_47] : memref<16x512xf32, #tpu.memory_space<vmem>> -> memref<1x512xf32, #tpu.memory_space<vmem>>
    %63 = tpu.memref_slice %arg4[%c0_i32_43, %c7_i32_44] : memref<2x8x!tpu.dma_semaphore, #tpu.memory_space<semaphore_mem>> -> memref<1x1x!tpu.dma_semaphore, #tpu.memory_space<semaphore_mem>>
    %64 = tpu.memref_squeeze %63 : memref<1x1x!tpu.dma_semaphore, #tpu.memory_space<semaphore_mem>> -> memref<!tpu.dma_semaphore, #tpu.memory_space<semaphore_mem>>
    tpu.enqueue_dma source(%61 : memref<1x512xf32, #tpu.memory_space<any>>) target(%62 : memref<1x512xf32, #tpu.memory_space<vmem>>) target_semaphore(%64 : memref<!tpu.dma_semaphore, #tpu.memory_space<semaphore_mem>>)
    %c8_i32 = arith.constant 8 : i32
    %65 = arith.addi %0, %c8_i32 : i32
    %c0_i32_48 = arith.constant 0 : i32
    %66 = arith.addi %65, %c0_i32_48 : i32
    %67 = arith.index_cast %66 : i32 to index
    %68 = memref.load %arg1[%67] : memref<16xi32, #tpu.memory_space<smem>>
    %c8_i32_49 = arith.constant 8 : i32
    %69 = arith.addi %0, %c8_i32_49 : i32
    %c1_i32_50 = arith.constant 1 : i32
    %70 = arith.addi %69, %c1_i32_50 : i32
    %71 = arith.index_cast %70 : i32 to index
    %72 = memref.load %arg1[%71] : memref<16xi32, #tpu.memory_space<smem>>
    %c8_i32_51 = arith.constant 8 : i32
    %73 = arith.addi %0, %c8_i32_51 : i32
    %c2_i32_52 = arith.constant 2 : i32
    %74 = arith.addi %73, %c2_i32_52 : i32
    %75 = arith.index_cast %74 : i32 to index
    %76 = memref.load %arg1[%75] : memref<16xi32, #tpu.memory_space<smem>>
    %c8_i32_53 = arith.constant 8 : i32
    %77 = arith.addi %0, %c8_i32_53 : i32
    %c3_i32_54 = arith.constant 3 : i32
    %78 = arith.addi %77, %c3_i32_54 : i32
    %79 = arith.index_cast %78 : i32 to index
    %80 = memref.load %arg1[%79] : memref<16xi32, #tpu.memory_space<smem>>
    %c8_i32_55 = arith.constant 8 : i32
    %81 = arith.addi %0, %c8_i32_55 : i32
    %c4_i32_56 = arith.constant 4 : i32
    %82 = arith.addi %81, %c4_i32_56 : i32
    %83 = arith.index_cast %82 : i32 to index
    %84 = memref.load %arg1[%83] : memref<16xi32, #tpu.memory_space<smem>>
    %c8_i32_57 = arith.constant 8 : i32
    %85 = arith.addi %0, %c8_i32_57 : i32
    %c5_i32_58 = arith.constant 5 : i32
    %86 = arith.addi %85, %c5_i32_58 : i32
    %87 = arith.index_cast %86 : i32 to index
    %88 = memref.load %arg1[%87] : memref<16xi32, #tpu.memory_space<smem>>
    %c8_i32_59 = arith.constant 8 : i32
    %89 = arith.addi %0, %c8_i32_59 : i32
    %c6_i32_60 = arith.constant 6 : i32
    %90 = arith.addi %89, %c6_i32_60 : i32
    %91 = arith.index_cast %90 : i32 to index
    %92 = memref.load %arg1[%91] : memref<16xi32, #tpu.memory_space<smem>>
    %c8_i32_61 = arith.constant 8 : i32
    %93 = arith.addi %0, %c8_i32_61 : i32
    %c7_i32_62 = arith.constant 7 : i32
    %94 = arith.addi %93, %c7_i32_62 : i32
    %95 = arith.index_cast %94 : i32 to index
    %96 = memref.load %arg1[%95] : memref<16xi32, #tpu.memory_space<smem>>
    %c1_i32_63 = arith.constant 1 : i32
    %c0_i32_64 = arith.constant 0 : i32
    %c0_i32_65 = arith.constant 0 : i32
    %97 = tpu.memref_slice %arg2[%68, %c0_i32_65] : memref<1000x512xf32, #tpu.memory_space<any>> -> memref<1x512xf32, #tpu.memory_space<any>>
    %c8_i32_66 = arith.constant 8 : i32
    %c0_i32_67 = arith.constant 0 : i32
    %98 = tpu.memref_slice %arg3[%c8_i32_66, %c0_i32_67] : memref<16x512xf32, #tpu.memory_space<vmem>> -> memref<1x512xf32, #tpu.memory_space<vmem>>
    %99 = tpu.memref_slice %arg4[%c1_i32_63, %c0_i32_64] : memref<2x8x!tpu.dma_semaphore, #tpu.memory_space<semaphore_mem>> -> memref<1x1x!tpu.dma_semaphore, #tpu.memory_space<semaphore_mem>>
    %100 = tpu.memref_squeeze %99 : memref<1x1x!tpu.dma_semaphore, #tpu.memory_space<semaphore_mem>> -> memref<!tpu.dma_semaphore, #tpu.memory_space<semaphore_mem>>
    tpu.enqueue_dma source(%97 : memref<1x512xf32, #tpu.memory_space<any>>) target(%98 : memref<1x512xf32, #tpu.memory_space<vmem>>) target_semaphore(%100 : memref<!tpu.dma_semaphore, #tpu.memory_space<semaphore_mem>>)
    %c1_i32_68 = arith.constant 1 : i32
    %c1_i32_69 = arith.constant 1 : i32
    %c0_i32_70 = arith.constant 0 : i32
    %101 = tpu.memref_slice %arg2[%72, %c0_i32_70] : memref<1000x512xf32, #tpu.memory_space<any>> -> memref<1x512xf32, #tpu.memory_space<any>>
    %c9_i32 = arith.constant 9 : i32
    %c0_i32_71 = arith.constant 0 : i32
    %102 = tpu.memref_slice %arg3[%c9_i32, %c0_i32_71] : memref<16x512xf32, #tpu.memory_space<vmem>> -> memref<1x512xf32, #tpu.memory_space<vmem>>
    %103 = tpu.memref_slice %arg4[%c1_i32_68, %c1_i32_69] : memref<2x8x!tpu.dma_semaphore, #tpu.memory_space<semaphore_mem>> -> memref<1x1x!tpu.dma_semaphore, #tpu.memory_space<semaphore_mem>>
    %104 = tpu.memref_squeeze %103 : memref<1x1x!tpu.dma_semaphore, #tpu.memory_space<semaphore_mem>> -> memref<!tpu.dma_semaphore, #tpu.memory_space<semaphore_mem>>
    tpu.enqueue_dma source(%101 : memref<1x512xf32, #tpu.memory_space<any>>) target(%102 : memref<1x512xf32, #tpu.memory_space<vmem>>) target_semaphore(%104 : memref<!tpu.dma_semaphore, #tpu.memory_space<semaphore_mem>>)
    %c1_i32_72 = arith.constant 1 : i32
    %c2_i32_73 = arith.constant 2 : i32
    %c0_i32_74 = arith.constant 0 : i32
    %105 = tpu.memref_slice %arg2[%76, %c0_i32_74] : memref<1000x512xf32, #tpu.memory_space<any>> -> memref<1x512xf32, #tpu.memory_space<any>>
    %c10_i32 = arith.constant 10 : i32
    %c0_i32_75 = arith.constant 0 : i32
    %106 = tpu.memref_slice %arg3[%c10_i32, %c0_i32_75] : memref<16x512xf32, #tpu.memory_space<vmem>> -> memref<1x512xf32, #tpu.memory_space<vmem>>
    %107 = tpu.memref_slice %arg4[%c1_i32_72, %c2_i32_73] : memref<2x8x!tpu.dma_semaphore, #tpu.memory_space<semaphore_mem>> -> memref<1x1x!tpu.dma_semaphore, #tpu.memory_space<semaphore_mem>>
    %108 = tpu.memref_squeeze %107 : memref<1x1x!tpu.dma_semaphore, #tpu.memory_space<semaphore_mem>> -> memref<!tpu.dma_semaphore, #tpu.memory_space<semaphore_mem>>
    tpu.enqueue_dma source(%105 : memref<1x512xf32, #tpu.memory_space<any>>) target(%106 : memref<1x512xf32, #tpu.memory_space<vmem>>) target_semaphore(%108 : memref<!tpu.dma_semaphore, #tpu.memory_space<semaphore_mem>>)
    %c1_i32_76 = arith.constant 1 : i32
    %c3_i32_77 = arith.constant 3 : i32
    %c0_i32_78 = arith.constant 0 : i32
    %109 = tpu.memref_slice %arg2[%80, %c0_i32_78] : memref<1000x512xf32, #tpu.memory_space<any>> -> memref<1x512xf32, #tpu.memory_space<any>>
    %c11_i32 = arith.constant 11 : i32
    %c0_i32_79 = arith.constant 0 : i32
    %110 = tpu.memref_slice %arg3[%c11_i32, %c0_i32_79] : memref<16x512xf32, #tpu.memory_space<vmem>> -> memref<1x512xf32, #tpu.memory_space<vmem>>
    %111 = tpu.memref_slice %arg4[%c1_i32_76, %c3_i32_77] : memref<2x8x!tpu.dma_semaphore, #tpu.memory_space<semaphore_mem>> -> memref<1x1x!tpu.dma_semaphore, #tpu.memory_space<semaphore_mem>>
    %112 = tpu.memref_squeeze %111 : memref<1x1x!tpu.dma_semaphore, #tpu.memory_space<semaphore_mem>> -> memref<!tpu.dma_semaphore, #tpu.memory_space<semaphore_mem>>
    tpu.enqueue_dma source(%109 : memref<1x512xf32, #tpu.memory_space<any>>) target(%110 : memref<1x512xf32, #tpu.memory_space<vmem>>) target_semaphore(%112 : memref<!tpu.dma_semaphore, #tpu.memory_space<semaphore_mem>>)
    %c1_i32_80 = arith.constant 1 : i32
    %c4_i32_81 = arith.constant 4 : i32
    %c0_i32_82 = arith.constant 0 : i32
    %113 = tpu.memref_slice %arg2[%84, %c0_i32_82] : memref<1000x512xf32, #tpu.memory_space<any>> -> memref<1x512xf32, #tpu.memory_space<any>>
    %c12_i32 = arith.constant 12 : i32
    %c0_i32_83 = arith.constant 0 : i32
    %114 = tpu.memref_slice %arg3[%c12_i32, %c0_i32_83] : memref<16x512xf32, #tpu.memory_space<vmem>> -> memref<1x512xf32, #tpu.memory_space<vmem>>
    %115 = tpu.memref_slice %arg4[%c1_i32_80, %c4_i32_81] : memref<2x8x!tpu.dma_semaphore, #tpu.memory_space<semaphore_mem>> -> memref<1x1x!tpu.dma_semaphore, #tpu.memory_space<semaphore_mem>>
    %116 = tpu.memref_squeeze %115 : memref<1x1x!tpu.dma_semaphore, #tpu.memory_space<semaphore_mem>> -> memref<!tpu.dma_semaphore, #tpu.memory_space<semaphore_mem>>
    tpu.enqueue_dma source(%113 : memref<1x512xf32, #tpu.memory_space<any>>) target(%114 : memref<1x512xf32, #tpu.memory_space<vmem>>) target_semaphore(%116 : memref<!tpu.dma_semaphore, #tpu.memory_space<semaphore_mem>>)
    %c1_i32_84 = arith.constant 1 : i32
    %c5_i32_85 = arith.constant 5 : i32
    %c0_i32_86 = arith.constant 0 : i32
    %117 = tpu.memref_slice %arg2[%88, %c0_i32_86] : memref<1000x512xf32, #tpu.memory_space<any>> -> memref<1x512xf32, #tpu.memory_space<any>>
    %c13_i32 = arith.constant 13 : i32
    %c0_i32_87 = arith.constant 0 : i32
    %118 = tpu.memref_slice %arg3[%c13_i32, %c0_i32_87] : memref<16x512xf32, #tpu.memory_space<vmem>> -> memref<1x512xf32, #tpu.memory_space<vmem>>
    %119 = tpu.memref_slice %arg4[%c1_i32_84, %c5_i32_85] : memref<2x8x!tpu.dma_semaphore, #tpu.memory_space<semaphore_mem>> -> memref<1x1x!tpu.dma_semaphore, #tpu.memory_space<semaphore_mem>>
    %120 = tpu.memref_squeeze %119 : memref<1x1x!tpu.dma_semaphore, #tpu.memory_space<semaphore_mem>> -> memref<!tpu.dma_semaphore, #tpu.memory_space<semaphore_mem>>
    tpu.enqueue_dma source(%117 : memref<1x512xf32, #tpu.memory_space<any>>) target(%118 : memref<1x512xf32, #tpu.memory_space<vmem>>) target_semaphore(%120 : memref<!tpu.dma_semaphore, #tpu.memory_space<semaphore_mem>>)
    %c1_i32_88 = arith.constant 1 : i32
    %c6_i32_89 = arith.constant 6 : i32
    %c0_i32_90 = arith.constant 0 : i32
    %121 = tpu.memref_slice %arg2[%92, %c0_i32_90] : memref<1000x512xf32, #tpu.memory_space<any>> -> memref<1x512xf32, #tpu.memory_space<any>>
    %c14_i32 = arith.constant 14 : i32
    %c0_i32_91 = arith.constant 0 : i32
    %122 = tpu.memref_slice %arg3[%c14_i32, %c0_i32_91] : memref<16x512xf32, #tpu.memory_space<vmem>> -> memref<1x512xf32, #tpu.memory_space<vmem>>
    %123 = tpu.memref_slice %arg4[%c1_i32_88, %c6_i32_89] : memref<2x8x!tpu.dma_semaphore, #tpu.memory_space<semaphore_mem>> -> memref<1x1x!tpu.dma_semaphore, #tpu.memory_space<semaphore_mem>>
    %124 = tpu.memref_squeeze %123 : memref<1x1x!tpu.dma_semaphore, #tpu.memory_space<semaphore_mem>> -> memref<!tpu.dma_semaphore, #tpu.memory_space<semaphore_mem>>
    tpu.enqueue_dma source(%121 : memref<1x512xf32, #tpu.memory_space<any>>) target(%122 : memref<1x512xf32, #tpu.memory_space<vmem>>) target_semaphore(%124 : memref<!tpu.dma_semaphore, #tpu.memory_space<semaphore_mem>>)
    %c1_i32_92 = arith.constant 1 : i32
    %c7_i32_93 = arith.constant 7 : i32
    %c0_i32_94 = arith.constant 0 : i32
    %125 = tpu.memref_slice %arg2[%96, %c0_i32_94] : memref<1000x512xf32, #tpu.memory_space<any>> -> memref<1x512xf32, #tpu.memory_space<any>>
    %c15_i32 = arith.constant 15 : i32
    %c0_i32_95 = arith.constant 0 : i32
    %126 = tpu.memref_slice %arg3[%c15_i32, %c0_i32_95] : memref<16x512xf32, #tpu.memory_space<vmem>> -> memref<1x512xf32, #tpu.memory_space<vmem>>
    %127 = tpu.memref_slice %arg4[%c1_i32_92, %c7_i32_93] : memref<2x8x!tpu.dma_semaphore, #tpu.memory_space<semaphore_mem>> -> memref<1x1x!tpu.dma_semaphore, #tpu.memory_space<semaphore_mem>>
    %128 = tpu.memref_squeeze %127 : memref<1x1x!tpu.dma_semaphore, #tpu.memory_space<semaphore_mem>> -> memref<!tpu.dma_semaphore, #tpu.memory_space<semaphore_mem>>
    tpu.enqueue_dma source(%125 : memref<1x512xf32, #tpu.memory_space<any>>) target(%126 : memref<1x512xf32, #tpu.memory_space<vmem>>) target_semaphore(%128 : memref<!tpu.dma_semaphore, #tpu.memory_space<semaphore_mem>>)
    %c0_i32_96 = arith.constant 0 : i32
    %c2_i32_97 = arith.constant 2 : i32
    %129 = arith.addi %c0_i32_96, %c2_i32_97 : i32
    %c1_i32_98 = arith.constant 1 : i32
    scf.for %arg5 = %c0_i32_96 to %129 step %c1_i32_98  : i32 {
      %c2_i32_100 = arith.constant 2 : i32
      %c0_i32_101 = arith.constant 0 : i32
      %130 = arith.cmpi eq, %c2_i32_100, %c0_i32_101 : i32
      %c1_i32_102 = arith.constant 1 : i32
      %131 = arith.select %130, %c1_i32_102, %c2_i32_100 : i32
      %132 = arith.remsi %arg5, %131 : i32
      %c0_i32_103 = arith.constant 0 : i32
      %133 = arith.cmpi ne, %132, %c0_i32_103 : i32
      %c0_i32_104 = arith.constant 0 : i32
      %134 = arith.cmpi slt, %132, %c0_i32_104 : i32
      %c0_i32_105 = arith.constant 0 : i32
      %135 = arith.cmpi slt, %131, %c0_i32_105 : i32
      %136 = arith.xori %134, %135 : i1
      %137 = arith.andi %136, %133 : i1
      %138 = arith.addi %132, %131 : i32
      %139 = arith.select %137, %138, %132 : i32
      %c2_i32_106 = arith.constant 2 : i32
      %140 = arith.addi %arg5, %c2_i32_106 : i32
      %c8_i32_107 = arith.constant 8 : i32
      %141 = arith.muli %140, %c8_i32_107 : i32
      %142 = arith.addi %0, %141 : i32
      %c0_i32_108 = arith.constant 0 : i32
      %143 = arith.addi %142, %c0_i32_108 : i32
      %c15_i32_109 = arith.constant 15 : i32
      %144 = arith.minsi %143, %c15_i32_109 : i32
      %145 = arith.index_cast %144 : i32 to index
      %146 = memref.load %arg1[%145] : memref<16xi32, #tpu.memory_space<smem>>
      %c8_i32_110 = arith.constant 8 : i32
      %147 = arith.muli %140, %c8_i32_110 : i32
      %148 = arith.addi %0, %147 : i32
      %c1_i32_111 = arith.constant 1 : i32
      %149 = arith.addi %148, %c1_i32_111 : i32
      %c15_i32_112 = arith.constant 15 : i32
      %150 = arith.minsi %149, %c15_i32_112 : i32
      %151 = arith.index_cast %150 : i32 to index
      %152 = memref.load %arg1[%151] : memref<16xi32, #tpu.memory_space<smem>>
      %c8_i32_113 = arith.constant 8 : i32
      %153 = arith.muli %140, %c8_i32_113 : i32
      %154 = arith.addi %0, %153 : i32
      %c2_i32_114 = arith.constant 2 : i32
      %155 = arith.addi %154, %c2_i32_114 : i32
      %c15_i32_115 = arith.constant 15 : i32
      %156 = arith.minsi %155, %c15_i32_115 : i32
      %157 = arith.index_cast %156 : i32 to index
      %158 = memref.load %arg1[%157] : memref<16xi32, #tpu.memory_space<smem>>
      %c8_i32_116 = arith.constant 8 : i32
      %159 = arith.muli %140, %c8_i32_116 : i32
      %160 = arith.addi %0, %159 : i32
      %c3_i32_117 = arith.constant 3 : i32
      %161 = arith.addi %160, %c3_i32_117 : i32
      %c15_i32_118 = arith.constant 15 : i32
      %162 = arith.minsi %161, %c15_i32_118 : i32
      %163 = arith.index_cast %162 : i32 to index
      %164 = memref.load %arg1[%163] : memref<16xi32, #tpu.memory_space<smem>>
      %c8_i32_119 = arith.constant 8 : i32
      %165 = arith.muli %140, %c8_i32_119 : i32
      %166 = arith.addi %0, %165 : i32
      %c4_i32_120 = arith.constant 4 : i32
      %167 = arith.addi %166, %c4_i32_120 : i32
      %c15_i32_121 = arith.constant 15 : i32
      %168 = arith.minsi %167, %c15_i32_121 : i32
      %169 = arith.index_cast %168 : i32 to index
      %170 = memref.load %arg1[%169] : memref<16xi32, #tpu.memory_space<smem>>
      %c8_i32_122 = arith.constant 8 : i32
      %171 = arith.muli %140, %c8_i32_122 : i32
      %172 = arith.addi %0, %171 : i32
      %c5_i32_123 = arith.constant 5 : i32
      %173 = arith.addi %172, %c5_i32_123 : i32
      %c15_i32_124 = arith.constant 15 : i32
      %174 = arith.minsi %173, %c15_i32_124 : i32
      %175 = arith.index_cast %174 : i32 to index
      %176 = memref.load %arg1[%175] : memref<16xi32, #tpu.memory_space<smem>>
      %c8_i32_125 = arith.constant 8 : i32
      %177 = arith.muli %140, %c8_i32_125 : i32
      %178 = arith.addi %0, %177 : i32
      %c6_i32_126 = arith.constant 6 : i32
      %179 = arith.addi %178, %c6_i32_126 : i32
      %c15_i32_127 = arith.constant 15 : i32
      %180 = arith.minsi %179, %c15_i32_127 : i32
      %181 = arith.index_cast %180 : i32 to index
      %182 = memref.load %arg1[%181] : memref<16xi32, #tpu.memory_space<smem>>
      %c8_i32_128 = arith.constant 8 : i32
      %183 = arith.muli %140, %c8_i32_128 : i32
      %184 = arith.addi %0, %183 : i32
      %c7_i32_129 = arith.constant 7 : i32
      %185 = arith.addi %184, %c7_i32_129 : i32
      %c15_i32_130 = arith.constant 15 : i32
      %186 = arith.minsi %185, %c15_i32_130 : i32
      %187 = arith.index_cast %186 : i32 to index
      %188 = memref.load %arg1[%187] : memref<16xi32, #tpu.memory_space<smem>>
      %c8_i32_131 = arith.constant 8 : i32
      %189 = arith.muli %arg5, %c8_i32_131 : i32
      %190 = tpu.assume_multiple %189, 8 : i32
      %c0_i32_132 = arith.constant 0 : i32
      %191 = arith.addi %190, %c0_i32_132 : i32
      %c0_i32_133 = arith.constant 0 : i32
      %c0_i32_134 = arith.constant 0 : i32
      %c0_i32_135 = arith.constant 0 : i32
      %192 = tpu.memref_slice %arg2[%c0_i32_134, %c0_i32_135] : memref<1000x512xf32, #tpu.memory_space<any>> -> memref<1x512xf32, #tpu.memory_space<any>>
      %c0_i32_136 = arith.constant 0 : i32
      %193 = tpu.memref_slice %arg3[%191, %c0_i32_136] : memref<16x512xf32, #tpu.memory_space<vmem>> -> memref<1x512xf32, #tpu.memory_space<vmem>>
      %194 = tpu.memref_slice %arg4[%139, %c0_i32_133] : memref<2x8x!tpu.dma_semaphore, #tpu.memory_space<semaphore_mem>> -> memref<1x1x!tpu.dma_semaphore, #tpu.memory_space<semaphore_mem>>
      %195 = tpu.memref_squeeze %194 : memref<1x1x!tpu.dma_semaphore, #tpu.memory_space<semaphore_mem>> -> memref<!tpu.dma_semaphore, #tpu.memory_space<semaphore_mem>>
      tpu.wait_dma2 semaphore(%195 : memref<!tpu.dma_semaphore, #tpu.memory_space<semaphore_mem>>) src(%192 : memref<1x512xf32, #tpu.memory_space<any>>) dst(%193 : memref<1x512xf32, #tpu.memory_space<vmem>>)
      %c1_i32_137 = arith.constant 1 : i32
      %196 = arith.addi %190, %c1_i32_137 : i32
      %c1_i32_138 = arith.constant 1 : i32
      %c0_i32_139 = arith.constant 0 : i32
      %c0_i32_140 = arith.constant 0 : i32
      %197 = tpu.memref_slice %arg2[%c0_i32_139, %c0_i32_140] : memref<1000x512xf32, #tpu.memory_space<any>> -> memref<1x512xf32, #tpu.memory_space<any>>
      %c0_i32_141 = arith.constant 0 : i32
      %198 = tpu.memref_slice %arg3[%196, %c0_i32_141] : memref<16x512xf32, #tpu.memory_space<vmem>> -> memref<1x512xf32, #tpu.memory_space<vmem>>
      %199 = tpu.memref_slice %arg4[%139, %c1_i32_138] : memref<2x8x!tpu.dma_semaphore, #tpu.memory_space<semaphore_mem>> -> memref<1x1x!tpu.dma_semaphore, #tpu.memory_space<semaphore_mem>>
      %200 = tpu.memref_squeeze %199 : memref<1x1x!tpu.dma_semaphore, #tpu.memory_space<semaphore_mem>> -> memref<!tpu.dma_semaphore, #tpu.memory_space<semaphore_mem>>
      tpu.wait_dma2 semaphore(%200 : memref<!tpu.dma_semaphore, #tpu.memory_space<semaphore_mem>>) src(%197 : memref<1x512xf32, #tpu.memory_space<any>>) dst(%198 : memref<1x512xf32, #tpu.memory_space<vmem>>)
      %c2_i32_142 = arith.constant 2 : i32
      %201 = arith.addi %190, %c2_i32_142 : i32
      %c2_i32_143 = arith.constant 2 : i32
      %c0_i32_144 = arith.constant 0 : i32
      %c0_i32_145 = arith.constant 0 : i32
      %202 = tpu.memref_slice %arg2[%c0_i32_144, %c0_i32_145] : memref<1000x512xf32, #tpu.memory_space<any>> -> memref<1x512xf32, #tpu.memory_space<any>>
      %c0_i32_146 = arith.constant 0 : i32
      %203 = tpu.memref_slice %arg3[%201, %c0_i32_146] : memref<16x512xf32, #tpu.memory_space<vmem>> -> memref<1x512xf32, #tpu.memory_space<vmem>>
      %204 = tpu.memref_slice %arg4[%139, %c2_i32_143] : memref<2x8x!tpu.dma_semaphore, #tpu.memory_space<semaphore_mem>> -> memref<1x1x!tpu.dma_semaphore, #tpu.memory_space<semaphore_mem>>
      %205 = tpu.memref_squeeze %204 : memref<1x1x!tpu.dma_semaphore, #tpu.memory_space<semaphore_mem>> -> memref<!tpu.dma_semaphore, #tpu.memory_space<semaphore_mem>>
      tpu.wait_dma2 semaphore(%205 : memref<!tpu.dma_semaphore, #tpu.memory_space<semaphore_mem>>) src(%202 : memref<1x512xf32, #tpu.memory_space<any>>) dst(%203 : memref<1x512xf32, #tpu.memory_space<vmem>>)
      %c3_i32_147 = arith.constant 3 : i32
      %206 = arith.addi %190, %c3_i32_147 : i32
      %c3_i32_148 = arith.constant 3 : i32
      %c0_i32_149 = arith.constant 0 : i32
      %c0_i32_150 = arith.constant 0 : i32
      %207 = tpu.memref_slice %arg2[%c0_i32_149, %c0_i32_150] : memref<1000x512xf32, #tpu.memory_space<any>> -> memref<1x512xf32, #tpu.memory_space<any>>
      %c0_i32_151 = arith.constant 0 : i32
      %208 = tpu.memref_slice %arg3[%206, %c0_i32_151] : memref<16x512xf32, #tpu.memory_space<vmem>> -> memref<1x512xf32, #tpu.memory_space<vmem>>
      %209 = tpu.memref_slice %arg4[%139, %c3_i32_148] : memref<2x8x!tpu.dma_semaphore, #tpu.memory_space<semaphore_mem>> -> memref<1x1x!tpu.dma_semaphore, #tpu.memory_space<semaphore_mem>>
      %210 = tpu.memref_squeeze %209 : memref<1x1x!tpu.dma_semaphore, #tpu.memory_space<semaphore_mem>> -> memref<!tpu.dma_semaphore, #tpu.memory_space<semaphore_mem>>
      tpu.wait_dma2 semaphore(%210 : memref<!tpu.dma_semaphore, #tpu.memory_space<semaphore_mem>>) src(%207 : memref<1x512xf32, #tpu.memory_space<any>>) dst(%208 : memref<1x512xf32, #tpu.memory_space<vmem>>)
      %c4_i32_152 = arith.constant 4 : i32
      %211 = arith.addi %190, %c4_i32_152 : i32
      %c4_i32_153 = arith.constant 4 : i32
      %c0_i32_154 = arith.constant 0 : i32
      %c0_i32_155 = arith.constant 0 : i32
      %212 = tpu.memref_slice %arg2[%c0_i32_154, %c0_i32_155] : memref<1000x512xf32, #tpu.memory_space<any>> -> memref<1x512xf32, #tpu.memory_space<any>>
      %c0_i32_156 = arith.constant 0 : i32
      %213 = tpu.memref_slice %arg3[%211, %c0_i32_156] : memref<16x512xf32, #tpu.memory_space<vmem>> -> memref<1x512xf32, #tpu.memory_space<vmem>>
      %214 = tpu.memref_slice %arg4[%139, %c4_i32_153] : memref<2x8x!tpu.dma_semaphore, #tpu.memory_space<semaphore_mem>> -> memref<1x1x!tpu.dma_semaphore, #tpu.memory_space<semaphore_mem>>
      %215 = tpu.memref_squeeze %214 : memref<1x1x!tpu.dma_semaphore, #tpu.memory_space<semaphore_mem>> -> memref<!tpu.dma_semaphore, #tpu.memory_space<semaphore_mem>>
      tpu.wait_dma2 semaphore(%215 : memref<!tpu.dma_semaphore, #tpu.memory_space<semaphore_mem>>) src(%212 : memref<1x512xf32, #tpu.memory_space<any>>) dst(%213 : memref<1x512xf32, #tpu.memory_space<vmem>>)
      %c5_i32_157 = arith.constant 5 : i32
      %216 = arith.addi %190, %c5_i32_157 : i32
      %c5_i32_158 = arith.constant 5 : i32
      %c0_i32_159 = arith.constant 0 : i32
      %c0_i32_160 = arith.constant 0 : i32
      %217 = tpu.memref_slice %arg2[%c0_i32_159, %c0_i32_160] : memref<1000x512xf32, #tpu.memory_space<any>> -> memref<1x512xf32, #tpu.memory_space<any>>
      %c0_i32_161 = arith.constant 0 : i32
      %218 = tpu.memref_slice %arg3[%216, %c0_i32_161] : memref<16x512xf32, #tpu.memory_space<vmem>> -> memref<1x512xf32, #tpu.memory_space<vmem>>
      %219 = tpu.memref_slice %arg4[%139, %c5_i32_158] : memref<2x8x!tpu.dma_semaphore, #tpu.memory_space<semaphore_mem>> -> memref<1x1x!tpu.dma_semaphore, #tpu.memory_space<semaphore_mem>>
      %220 = tpu.memref_squeeze %219 : memref<1x1x!tpu.dma_semaphore, #tpu.memory_space<semaphore_mem>> -> memref<!tpu.dma_semaphore, #tpu.memory_space<semaphore_mem>>
      tpu.wait_dma2 semaphore(%220 : memref<!tpu.dma_semaphore, #tpu.memory_space<semaphore_mem>>) src(%217 : memref<1x512xf32, #tpu.memory_space<any>>) dst(%218 : memref<1x512xf32, #tpu.memory_space<vmem>>)
      %c6_i32_162 = arith.constant 6 : i32
      %221 = arith.addi %190, %c6_i32_162 : i32
      %c6_i32_163 = arith.constant 6 : i32
      %c0_i32_164 = arith.constant 0 : i32
      %c0_i32_165 = arith.constant 0 : i32
      %222 = tpu.memref_slice %arg2[%c0_i32_164, %c0_i32_165] : memref<1000x512xf32, #tpu.memory_space<any>> -> memref<1x512xf32, #tpu.memory_space<any>>
      %c0_i32_166 = arith.constant 0 : i32
      %223 = tpu.memref_slice %arg3[%221, %c0_i32_166] : memref<16x512xf32, #tpu.memory_space<vmem>> -> memref<1x512xf32, #tpu.memory_space<vmem>>
      %224 = tpu.memref_slice %arg4[%139, %c6_i32_163] : memref<2x8x!tpu.dma_semaphore, #tpu.memory_space<semaphore_mem>> -> memref<1x1x!tpu.dma_semaphore, #tpu.memory_space<semaphore_mem>>
      %225 = tpu.memref_squeeze %224 : memref<1x1x!tpu.dma_semaphore, #tpu.memory_space<semaphore_mem>> -> memref<!tpu.dma_semaphore, #tpu.memory_space<semaphore_mem>>
      tpu.wait_dma2 semaphore(%225 : memref<!tpu.dma_semaphore, #tpu.memory_space<semaphore_mem>>) src(%222 : memref<1x512xf32, #tpu.memory_space<any>>) dst(%223 : memref<1x512xf32, #tpu.memory_space<vmem>>)
      %c7_i32_167 = arith.constant 7 : i32
      %226 = arith.addi %190, %c7_i32_167 : i32
      %c7_i32_168 = arith.constant 7 : i32
      %c0_i32_169 = arith.constant 0 : i32
      %c0_i32_170 = arith.constant 0 : i32
      %227 = tpu.memref_slice %arg2[%c0_i32_169, %c0_i32_170] : memref<1000x512xf32, #tpu.memory_space<any>> -> memref<1x512xf32, #tpu.memory_space<any>>
      %c0_i32_171 = arith.constant 0 : i32
      %228 = tpu.memref_slice %arg3[%226, %c0_i32_171] : memref<16x512xf32, #tpu.memory_space<vmem>> -> memref<1x512xf32, #tpu.memory_space<vmem>>
      %229 = tpu.memref_slice %arg4[%139, %c7_i32_168] : memref<2x8x!tpu.dma_semaphore, #tpu.memory_space<semaphore_mem>> -> memref<1x1x!tpu.dma_semaphore, #tpu.memory_space<semaphore_mem>>
      %230 = tpu.memref_squeeze %229 : memref<1x1x!tpu.dma_semaphore, #tpu.memory_space<semaphore_mem>> -> memref<!tpu.dma_semaphore, #tpu.memory_space<semaphore_mem>>
      tpu.wait_dma2 semaphore(%230 : memref<!tpu.dma_semaphore, #tpu.memory_space<semaphore_mem>>) src(%227 : memref<1x512xf32, #tpu.memory_space<any>>) dst(%228 : memref<1x512xf32, #tpu.memory_space<vmem>>)
      %c2_i32_172 = arith.constant 2 : i32
      %231 = arith.cmpi slt, %140, %c2_i32_172 : i32
      %232 = arith.extui %231 : i1 to i32
      %c0_i32_173 = arith.constant 0 : i32
      %233 = arith.cmpi ne, %232, %c0_i32_173 : i32
      scf.if %233 {
        %c8_i32_175 = arith.constant 8 : i32
        %240 = arith.muli %140, %c8_i32_175 : i32
        %241 = tpu.assume_multiple %240, 8 : i32
        %c0_i32_176 = arith.constant 0 : i32
        %242 = arith.addi %241, %c0_i32_176 : i32
        %c0_i32_177 = arith.constant 0 : i32
        %c0_i32_178 = arith.constant 0 : i32
        %243 = tpu.memref_slice %arg2[%146, %c0_i32_178] : memref<1000x512xf32, #tpu.memory_space<any>> -> memref<1x512xf32, #tpu.memory_space<any>>
        %c0_i32_179 = arith.constant 0 : i32
        %244 = tpu.memref_slice %arg3[%242, %c0_i32_179] : memref<16x512xf32, #tpu.memory_space<vmem>> -> memref<1x512xf32, #tpu.memory_space<vmem>>
        %245 = tpu.memref_slice %arg4[%139, %c0_i32_177] : memref<2x8x!tpu.dma_semaphore, #tpu.memory_space<semaphore_mem>> -> memref<1x1x!tpu.dma_semaphore, #tpu.memory_space<semaphore_mem>>
        %246 = tpu.memref_squeeze %245 : memref<1x1x!tpu.dma_semaphore, #tpu.memory_space<semaphore_mem>> -> memref<!tpu.dma_semaphore, #tpu.memory_space<semaphore_mem>>
        tpu.enqueue_dma source(%243 : memref<1x512xf32, #tpu.memory_space<any>>) target(%244 : memref<1x512xf32, #tpu.memory_space<vmem>>) target_semaphore(%246 : memref<!tpu.dma_semaphore, #tpu.memory_space<semaphore_mem>>)
        %c1_i32_180 = arith.constant 1 : i32
        %247 = arith.addi %241, %c1_i32_180 : i32
        %c1_i32_181 = arith.constant 1 : i32
        %c0_i32_182 = arith.constant 0 : i32
        %248 = tpu.memref_slice %arg2[%152, %c0_i32_182] : memref<1000x512xf32, #tpu.memory_space<any>> -> memref<1x512xf32, #tpu.memory_space<any>>
        %c0_i32_183 = arith.constant 0 : i32
        %249 = tpu.memref_slice %arg3[%247, %c0_i32_183] : memref<16x512xf32, #tpu.memory_space<vmem>> -> memref<1x512xf32, #tpu.memory_space<vmem>>
        %250 = tpu.memref_slice %arg4[%139, %c1_i32_181] : memref<2x8x!tpu.dma_semaphore, #tpu.memory_space<semaphore_mem>> -> memref<1x1x!tpu.dma_semaphore, #tpu.memory_space<semaphore_mem>>
        %251 = tpu.memref_squeeze %250 : memref<1x1x!tpu.dma_semaphore, #tpu.memory_space<semaphore_mem>> -> memref<!tpu.dma_semaphore, #tpu.memory_space<semaphore_mem>>
        tpu.enqueue_dma source(%248 : memref<1x512xf32, #tpu.memory_space<any>>) target(%249 : memref<1x512xf32, #tpu.memory_space<vmem>>) target_semaphore(%251 : memref<!tpu.dma_semaphore, #tpu.memory_space<semaphore_mem>>)
        %c2_i32_184 = arith.constant 2 : i32
        %252 = arith.addi %241, %c2_i32_184 : i32
        %c2_i32_185 = arith.constant 2 : i32
        %c0_i32_186 = arith.constant 0 : i32
        %253 = tpu.memref_slice %arg2[%158, %c0_i32_186] : memref<1000x512xf32, #tpu.memory_space<any>> -> memref<1x512xf32, #tpu.memory_space<any>>
        %c0_i32_187 = arith.constant 0 : i32
        %254 = tpu.memref_slice %arg3[%252, %c0_i32_187] : memref<16x512xf32, #tpu.memory_space<vmem>> -> memref<1x512xf32, #tpu.memory_space<vmem>>
        %255 = tpu.memref_slice %arg4[%139, %c2_i32_185] : memref<2x8x!tpu.dma_semaphore, #tpu.memory_space<semaphore_mem>> -> memref<1x1x!tpu.dma_semaphore, #tpu.memory_space<semaphore_mem>>
        %256 = tpu.memref_squeeze %255 : memref<1x1x!tpu.dma_semaphore, #tpu.memory_space<semaphore_mem>> -> memref<!tpu.dma_semaphore, #tpu.memory_space<semaphore_mem>>
        tpu.enqueue_dma source(%253 : memref<1x512xf32, #tpu.memory_space<any>>) target(%254 : memref<1x512xf32, #tpu.memory_space<vmem>>) target_semaphore(%256 : memref<!tpu.dma_semaphore, #tpu.memory_space<semaphore_mem>>)
        %c3_i32_188 = arith.constant 3 : i32
        %257 = arith.addi %241, %c3_i32_188 : i32
        %c3_i32_189 = arith.constant 3 : i32
        %c0_i32_190 = arith.constant 0 : i32
        %258 = tpu.memref_slice %arg2[%164, %c0_i32_190] : memref<1000x512xf32, #tpu.memory_space<any>> -> memref<1x512xf32, #tpu.memory_space<any>>
        %c0_i32_191 = arith.constant 0 : i32
        %259 = tpu.memref_slice %arg3[%257, %c0_i32_191] : memref<16x512xf32, #tpu.memory_space<vmem>> -> memref<1x512xf32, #tpu.memory_space<vmem>>
        %260 = tpu.memref_slice %arg4[%139, %c3_i32_189] : memref<2x8x!tpu.dma_semaphore, #tpu.memory_space<semaphore_mem>> -> memref<1x1x!tpu.dma_semaphore, #tpu.memory_space<semaphore_mem>>
        %261 = tpu.memref_squeeze %260 : memref<1x1x!tpu.dma_semaphore, #tpu.memory_space<semaphore_mem>> -> memref<!tpu.dma_semaphore, #tpu.memory_space<semaphore_mem>>
        tpu.enqueue_dma source(%258 : memref<1x512xf32, #tpu.memory_space<any>>) target(%259 : memref<1x512xf32, #tpu.memory_space<vmem>>) target_semaphore(%261 : memref<!tpu.dma_semaphore, #tpu.memory_space<semaphore_mem>>)
        %c4_i32_192 = arith.constant 4 : i32
        %262 = arith.addi %241, %c4_i32_192 : i32
        %c4_i32_193 = arith.constant 4 : i32
        %c0_i32_194 = arith.constant 0 : i32
        %263 = tpu.memref_slice %arg2[%170, %c0_i32_194] : memref<1000x512xf32, #tpu.memory_space<any>> -> memref<1x512xf32, #tpu.memory_space<any>>
        %c0_i32_195 = arith.constant 0 : i32
        %264 = tpu.memref_slice %arg3[%262, %c0_i32_195] : memref<16x512xf32, #tpu.memory_space<vmem>> -> memref<1x512xf32, #tpu.memory_space<vmem>>
        %265 = tpu.memref_slice %arg4[%139, %c4_i32_193] : memref<2x8x!tpu.dma_semaphore, #tpu.memory_space<semaphore_mem>> -> memref<1x1x!tpu.dma_semaphore, #tpu.memory_space<semaphore_mem>>
        %266 = tpu.memref_squeeze %265 : memref<1x1x!tpu.dma_semaphore, #tpu.memory_space<semaphore_mem>> -> memref<!tpu.dma_semaphore, #tpu.memory_space<semaphore_mem>>
        tpu.enqueue_dma source(%263 : memref<1x512xf32, #tpu.memory_space<any>>) target(%264 : memref<1x512xf32, #tpu.memory_space<vmem>>) target_semaphore(%266 : memref<!tpu.dma_semaphore, #tpu.memory_space<semaphore_mem>>)
        %c5_i32_196 = arith.constant 5 : i32
        %267 = arith.addi %241, %c5_i32_196 : i32
        %c5_i32_197 = arith.constant 5 : i32
        %c0_i32_198 = arith.constant 0 : i32
        %268 = tpu.memref_slice %arg2[%176, %c0_i32_198] : memref<1000x512xf32, #tpu.memory_space<any>> -> memref<1x512xf32, #tpu.memory_space<any>>
        %c0_i32_199 = arith.constant 0 : i32
        %269 = tpu.memref_slice %arg3[%267, %c0_i32_199] : memref<16x512xf32, #tpu.memory_space<vmem>> -> memref<1x512xf32, #tpu.memory_space<vmem>>
        %270 = tpu.memref_slice %arg4[%139, %c5_i32_197] : memref<2x8x!tpu.dma_semaphore, #tpu.memory_space<semaphore_mem>> -> memref<1x1x!tpu.dma_semaphore, #tpu.memory_space<semaphore_mem>>
        %271 = tpu.memref_squeeze %270 : memref<1x1x!tpu.dma_semaphore, #tpu.memory_space<semaphore_mem>> -> memref<!tpu.dma_semaphore, #tpu.memory_space<semaphore_mem>>
        tpu.enqueue_dma source(%268 : memref<1x512xf32, #tpu.memory_space<any>>) target(%269 : memref<1x512xf32, #tpu.memory_space<vmem>>) target_semaphore(%271 : memref<!tpu.dma_semaphore, #tpu.memory_space<semaphore_mem>>)
        %c6_i32_200 = arith.constant 6 : i32
        %272 = arith.addi %241, %c6_i32_200 : i32
        %c6_i32_201 = arith.constant 6 : i32
        %c0_i32_202 = arith.constant 0 : i32
        %273 = tpu.memref_slice %arg2[%182, %c0_i32_202] : memref<1000x512xf32, #tpu.memory_space<any>> -> memref<1x512xf32, #tpu.memory_space<any>>
        %c0_i32_203 = arith.constant 0 : i32
        %274 = tpu.memref_slice %arg3[%272, %c0_i32_203] : memref<16x512xf32, #tpu.memory_space<vmem>> -> memref<1x512xf32, #tpu.memory_space<vmem>>
        %275 = tpu.memref_slice %arg4[%139, %c6_i32_201] : memref<2x8x!tpu.dma_semaphore, #tpu.memory_space<semaphore_mem>> -> memref<1x1x!tpu.dma_semaphore, #tpu.memory_space<semaphore_mem>>
        %276 = tpu.memref_squeeze %275 : memref<1x1x!tpu.dma_semaphore, #tpu.memory_space<semaphore_mem>> -> memref<!tpu.dma_semaphore, #tpu.memory_space<semaphore_mem>>
        tpu.enqueue_dma source(%273 : memref<1x512xf32, #tpu.memory_space<any>>) target(%274 : memref<1x512xf32, #tpu.memory_space<vmem>>) target_semaphore(%276 : memref<!tpu.dma_semaphore, #tpu.memory_space<semaphore_mem>>)
        %c7_i32_204 = arith.constant 7 : i32
        %277 = arith.addi %241, %c7_i32_204 : i32
        %c7_i32_205 = arith.constant 7 : i32
        %c0_i32_206 = arith.constant 0 : i32
        %278 = tpu.memref_slice %arg2[%188, %c0_i32_206] : memref<1000x512xf32, #tpu.memory_space<any>> -> memref<1x512xf32, #tpu.memory_space<any>>
        %c0_i32_207 = arith.constant 0 : i32
        %279 = tpu.memref_slice %arg3[%277, %c0_i32_207] : memref<16x512xf32, #tpu.memory_space<vmem>> -> memref<1x512xf32, #tpu.memory_space<vmem>>
        %280 = tpu.memref_slice %arg4[%139, %c7_i32_205] : memref<2x8x!tpu.dma_semaphore, #tpu.memory_space<semaphore_mem>> -> memref<1x1x!tpu.dma_semaphore, #tpu.memory_space<semaphore_mem>>
        %281 = tpu.memref_squeeze %280 : memref<1x1x!tpu.dma_semaphore, #tpu.memory_space<semaphore_mem>> -> memref<!tpu.dma_semaphore, #tpu.memory_space<semaphore_mem>>
        tpu.enqueue_dma source(%278 : memref<1x512xf32, #tpu.memory_space<any>>) target(%279 : memref<1x512xf32, #tpu.memory_space<vmem>>) target_semaphore(%281 : memref<!tpu.dma_semaphore, #tpu.memory_space<semaphore_mem>>)
      } else {
      }
      %234 = arith.index_cast %190 : i32 to index
      %c0 = arith.constant 0 : index
      %235 = vector.load %arg3[%234, %c0] : memref<16x512xf32, #tpu.memory_space<vmem>>, vector<8x512xf32>
      %cst = arith.constant 22.6274166 : f32
      %236 = vector.broadcast %cst : f32 to vector<8x512xf32>
      %237 = arith.mulf %235, %236 : vector<8x512xf32>
      %238 = arith.index_cast %190 : i32 to index
      %c0_174 = arith.constant 0 : index
      %239 = vector.load %arg3[%238, %c0_174] : memref<16x512xf32, #tpu.memory_space<vmem>>, vector<8x512xf32>
      tpu.vector_store %arg3[%238, %c0_174], %237 {strides = array<i32>} : memref<16x512xf32, #tpu.memory_space<vmem>>, vector<8x512xf32>,
    }
    %c2_i32_99 = arith.constant 2 : i32
    return
  }
  func.func @transform_1(%arg0: i32, %arg1: memref<16xi32, #tpu.memory_space<smem>>) -> (i32, i32) {
    %c0_i32 = arith.constant 0 : i32
    %c0_i32_0 = arith.constant 0 : i32
    return %arg0, %c0_i32 : i32, i32
  }
}

</mosaic_0001>

<bundles_post_ra>
// kernel: tpu_custom_call.1
= control target key start
LH: loop header
LB: loop body
LE: loop exit
PB: predicated region body
PF: predicated region fallthrough
CT: control target
= control target key end

     0   :  { %s1532_s9 = smov [#allocation4]   ;;  %s2241_s0 = inlined_call_operand.hbm [shape: s32[16], index: 0, kind: input, shape index: {}]   ;;  %s2242_s1 = inlined_call_operand.hbm [shape: f32[1000,512], index: 1, kind: input, shape index: {}]   ;;  %s2243_s2 = inlined_call_operand.hbm [shape: f32[16,512], index: 2, kind: output, shape index: {}]  }
   0x1   :  { %2264 = sst [smem:[#allocation55_spill]] %s2243_s2 }
   0x2   :  { %8 = dma.hbm_to_smem %s2241_s0, 16, %s1532_s9, [#allocation3] }
   0x3   :  { %1508 = dma.done.wait [#allocation3], 16 }
   0x4   :  { %1509 = vsyncadd [#allocation3], 4294967280 }
   0x5   :  { %10 = sfence }
   0x6   :  { %11 = vsyncpa [#allocation6], 0  ;;  %s13_s12 = sld [smem:[#allocation4]]  ;;  %s1533_s13 = smov [#allocation5]  }
   0x7   :  { %s35_s14 = sshll.u32 %s1533_s13, 4  ;;  %s1575_s15 = sld [smem:[#allocation4 + $0x1]]  ;;  %s1573_s14 = int_to_ptr.vmem [resolvable:$true] %s35_s14 }
   0x8   :  { %s1534_s16 = smov [#allocation5 + $0x1]   ;;  %s1577_s18 = sld [smem:[#allocation4 + $0x2]] }
   0x9   :  { %s48_s17 = sshll.u32 %s1534_s16, 4  ;;  %s1535_s21 = smov [#allocation5 + $0x2]   ;;  %s1579_s17 = int_to_ptr.vmem [resolvable:$true] %s48_s17 }
   0xa   :  { %s61_s22 = sshll.u32 %s1535_s21, 4  ;;  %s1591_s5 = scalar_lea.hbm %s2242_s1, 64000  ;;  %s1581_s22 = int_to_ptr.vmem [resolvable:$true] %s61_s22 }
   0xc   :  { %s28_s0 = sshrl.u32 %s13_s12, 3  ;;  %s29_s19 = sand.u32 7, %s13_s12  }
   0xd   :  { %s776_s20 = sshll.u32 %s28_s0, 5  ;;  %s39_s25 = sshrl.u32 %s1575_s15, 3 }
   0xe   :  { %s31_s23 = sadd.s32 %s776_s20, %s29_s19  ;;  %s40_s29 = sand.u32 7, %s1575_s15  }
   0xf   :  { %s777_s24 = sshll.u32 %s31_s23, 4 }
  0x10   :  { %s33_s28 = scalar_lea.hbm %s2242_s1, %s777_s24 }
  0x11   :  { %s924_s30 = scalar_lea.hbm %s33_s28, 64  ;;  %p927_p1 = scmp.lt.s32.totalorder %s33_s28, %s2242_s1 }
  0x12   :  { %p925_p0 = scmp.ne.s32.totalorder %s33_s28, %s924_s30  ;;  %p928_p2 = scmp.lt.s32.totalorder %s1591_s5, %s924_s30 }
  0x14   :  { %p929_p3 = por %p928_p2, %p927_p1 }
  0x16   :  { %p930_p4 = pnand %p929_p3, %p925_p0 }
  0x18   :  { %933 = shalt.err (!%p930_p4)  }
  0x19   :  { %s934_s8 = scalar_lea.vmem %s1573_s14, 64  ;;  %s1600_s9 = scalar_lea.vmem %s1573_s14, 1024 }
  0x1a   :  { %p935_p5 = scmp.ne.s32.totalorder %s1573_s14, %s934_s8  ;;  %p939_p6 = scmp.lt.s32.totalorder %s1573_s14, %s1573_s14 }
  0x1b   :  { %p940_p7 = scmp.lt.s32.totalorder %s1600_s9, %s934_s8 }
  0x1d   :  { %p941_p8 = por %p940_p7, %p939_p6 }
  0x1f   :  { %p942_p9 = pnand %p941_p8, %p935_p5 }
  0x21   :  { %945 = shalt.err (!%p942_p9)  }
  0x22   :  { %s1536_s10 = smov 128   ;;  %s1537_s11 = smov 1  }
  0x23   :  { %38 = dma.hbm_to_vmem [thread:$0]  %s33_s28, 64, %s1573_s14, [#allocation2], %s1536_s10, %s1536_s10, %s1537_s11 }
  0x24   :  { %s778_s12 = sshll.u32 %s39_s25, 5  ;;  %s52_s13 = sshrl.u32 %s1577_s18, 3 }
  0x25   :  { %s42_s15 = sadd.s32 %s778_s12, %s40_s29  ;;  %s53_s16 = sand.u32 7, %s1577_s18  }
  0x26   :  { %s779_s0 = sshll.u32 %s42_s15, 4  ;;  %s780_s19 = sshll.u32 %s52_s13, 5 }
  0x27   :  { %s44_s23 = scalar_lea.hbm %s2242_s1, %s779_s0  ;;  %s55_s24 = sadd.s32 %s780_s19, %s53_s16 }
  0x28   :  { %s946_s26 = scalar_lea.hbm %s44_s23, 64  ;;  %p949_p11 = scmp.lt.s32.totalorder %s44_s23, %s2242_s1 }
  0x29   :  { %p947_p10 = scmp.ne.s32.totalorder %s44_s23, %s946_s26  ;;  %p950_p12 = scmp.lt.s32.totalorder %s1591_s5, %s946_s26 }
  0x2b   :  { %p951_p13 = por %p950_p12, %p949_p11 }
  0x2d   :  { %p952_p0 = pnand %p951_p13, %p947_p10 }
  0x2f   :  { %955 = shalt.err (!%p952_p0)  }
  0x30   :  { %s956_s18 = scalar_lea.vmem %s1579_s17, 64  ;;  %p961_p2 = scmp.lt.s32.totalorder %s1579_s17, %s1573_s14 }
  0x31   :  { %p957_p1 = scmp.ne.s32.totalorder %s1579_s17, %s956_s18  ;;  %p962_p3 = scmp.lt.s32.totalorder %s1600_s9, %s956_s18 }
  0x33   :  { %p963_p4 = por %p962_p3, %p961_p2 }
  0x35   :  { %p964_p5 = pnand %p963_p4, %p957_p1 }
  0x37   :  { %967 = shalt.err (!%p964_p5)  }
  0x38   :  { %51 = dma.hbm_to_vmem [thread:$0]  %s44_s23, 64, %s1579_s17, [#allocation2 + $0x1], %s1536_s10, %s1536_s10, %s1537_s11 }
  0x39   :  { %s781_s25 = sshll.u32 %s55_s24, 4  ;;  %s1630_s28 = sld [smem:[#allocation4 + $0x3]] }
  0x3a   :  { %s57_s4 = scalar_lea.hbm %s2242_s1, %s781_s25 }
  0x3b   :  { %s968_s6 = scalar_lea.hbm %s57_s4, 64  ;;  %p971_p8 = scmp.lt.s32.totalorder %s57_s4, %s2242_s1 }
  0x3c   :  { %p969_p7 = scmp.ne.s32.totalorder %s57_s4, %s968_s6  ;;  %p972_p9 = scmp.lt.s32.totalorder %s1591_s5, %s968_s6 }
  0x3e   :  { %p973_p10 = por %p972_p9, %p971_p8 }
  0x40   :  { %p974_p11 = pnand %p973_p10, %p969_p7 }
  0x42   :  { %977 = shalt.err (!%p974_p11)  }
  0x43   :  { %s978_s17 = scalar_lea.vmem %s1581_s22, 64  ;;  %p983_p13 = scmp.lt.s32.totalorder %s1581_s22, %s1573_s14 }
  0x44   :  { %p979_p12 = scmp.ne.s32.totalorder %s1581_s22, %s978_s17  ;;  %p984_p0 = scmp.lt.s32.totalorder %s1600_s9, %s978_s17 }
  0x46   :  { %p985_p1 = por %p984_p0, %p983_p13 }
  0x48   :  { %p986_p2 = pnand %p985_p1, %p979_p12 }
  0x4a   :  { %989 = shalt.err (!%p986_p2)  }
  0x4b   :  { %64 = dma.hbm_to_vmem [thread:$0]  %s57_s4, 64, %s1581_s22, [#allocation2 + $0x2], %s1536_s10, %s1536_s10, %s1537_s11 }
  0x4c   :  { %s1538_s12 = smov [#allocation5 + $0x3]   ;;  %s1648_s15 = sld [smem:[#allocation4 + $0x4]] }
  0x4d   :  { %s74_s13 = sshll.u32 %s1538_s12, 4  ;;  %s1539_s16 = smov [#allocation5 + $0x4]   ;;  %s1650_s13 = int_to_ptr.vmem [resolvable:$true] %s74_s13 }
  0x4e   :  { %s87_s0 = sshll.u32 %s1539_s16, 4  ;;  %s1652_s19 = sld [smem:[#allocation4 + $0x5]]  ;;  %s1656_s0 = int_to_ptr.vmem [resolvable:$true] %s87_s0 }
  0x4f   :  { %s65_s20 = sshrl.u32 %s1630_s28, 3  ;;  %s66_s21 = sand.u32 7, %s1630_s28  }
  0x50   :  { %s782_s23 = sshll.u32 %s65_s20, 5 }
  0x51   :  { %s68_s24 = sadd.s32 %s782_s23, %s66_s21 }
  0x52   :  { %s783_s22 = sshll.u32 %s68_s24, 4  ;;  %s78_s26 = sshrl.u32 %s1648_s15, 3 }
  0x53   :  { %s70_s18 = scalar_lea.hbm %s2242_s1, %s783_s22  ;;  %s79_s25 = sand.u32 7, %s1648_s15  }
  0x54   :  { %s990_s29 = scalar_lea.hbm %s70_s18, 64  ;;  %p993_p4 = scmp.lt.s32.totalorder %s70_s18, %s2242_s1 }
  0x55   :  { %p991_p3 = scmp.ne.s32.totalorder %s70_s18, %s990_s29  ;;  %p994_p5 = scmp.lt.s32.totalorder %s1591_s5, %s990_s29 }
  0x57   :  { %p995_p7 = por %p994_p5, %p993_p4 }
  0x59   :  { %p996_p8 = pnand %p995_p7, %p991_p3 }
  0x5b   :  { %999 = shalt.err (!%p996_p8)  }
  0x5c   :  { %s1000_s28 = scalar_lea.vmem %s1650_s13, 64  ;;  %p1005_p10 = scmp.lt.s32.totalorder %s1650_s13, %s1573_s14 }
  0x5d   :  { %p1001_p9 = scmp.ne.s32.totalorder %s1650_s13, %s1000_s28  ;;  %p1006_p11 = scmp.lt.s32.totalorder %s1600_s9, %s1000_s28 }
  0x5f   :  { %p1007_p12 = por %p1006_p11, %p1005_p10 }
  0x61   :  { %p1008_p13 = pnand %p1007_p12, %p1001_p9 }
  0x63   :  { %1011 = shalt.err (!%p1008_p13)  }
  0x64   :  { %77 = dma.hbm_to_vmem [thread:$0]  %s70_s18, 64, %s1650_s13, [#allocation2 + $0x3], %s1536_s10, %s1536_s10, %s1537_s11 }
  0x65   :  { %s784_s6 = sshll.u32 %s78_s26, 5  ;;  %s91_s7 = sshrl.u32 %s1652_s19, 3 }
  0x66   :  { %s81_s8 = sadd.s32 %s784_s6, %s79_s25  ;;  %s92_s17 = sand.u32 7, %s1652_s19  }
  0x67   :  { %s785_s12 = sshll.u32 %s81_s8, 4  ;;  %s786_s15 = sshll.u32 %s91_s7, 5 }
  0x68   :  { %s83_s21 = scalar_lea.hbm %s2242_s1, %s785_s12  ;;  %s94_s23 = sadd.s32 %s786_s15, %s92_s17 }
  0x69   :  { %s1012_s24 = scalar_lea.hbm %s83_s21, 64  ;;  %p1015_p1 = scmp.lt.s32.totalorder %s83_s21, %s2242_s1 }
  0x6a   :  { %p1013_p0 = scmp.ne.s32.totalorder %s83_s21, %s1012_s24  ;;  %p1016_p2 = scmp.lt.s32.totalorder %s1591_s5, %s1012_s24 }
  0x6c   :  { %p1017_p3 = por %p1016_p2, %p1015_p1 }
  0x6e   :  { %p1018_p4 = pnand %p1017_p3, %p1013_p0 }
  0x70   :  { %1021 = shalt.err (!%p1018_p4)  }
  0x71   :  { %s1022_s13 = scalar_lea.vmem %s1656_s0, 64  ;;  %p1027_p7 = scmp.lt.s32.totalorder %s1656_s0, %s1573_s14 }
  0x72   :  { %p1023_p5 = scmp.ne.s32.totalorder %s1656_s0, %s1022_s13  ;;  %p1028_p8 = scmp.lt.s32.totalorder %s1600_s9, %s1022_s13 }
  0x74   :  { %p1029_p9 = por %p1028_p8, %p1027_p7 }
  0x76   :  { %p1030_p10 = pnand %p1029_p9, %p1023_p5 }
  0x78   :  { %1033 = shalt.err (!%p1030_p10)  }
  0x79   :  { %90 = dma.hbm_to_vmem [thread:$0]  %s83_s21, 64, %s1656_s0, [#allocation2 + $0x4], %s1536_s10, %s1536_s10, %s1537_s11 }
  0x7a   :  { %s787_s19 = sshll.u32 %s94_s23, 4  ;;  %s1540_s26 = smov [#allocation5 + $0x5]  }
  0x7b   :  { %s100_s30 = sshll.u32 %s1540_s26, 4  ;;  %s96_s29 = scalar_lea.hbm %s2242_s1, %s787_s19  ;;  %s101_s30 = int_to_ptr.vmem [resolvable:$true] %s100_s30 }
  0x7c   :  { %s1034_s3 = scalar_lea.hbm %s96_s29, 64  ;;  %p1037_p12 = scmp.lt.s32.totalorder %s96_s29, %s2242_s1 }
  0x7d   :  { %p1035_p11 = scmp.ne.s32.totalorder %s96_s29, %s1034_s3  ;;  %p1038_p13 = scmp.lt.s32.totalorder %s1591_s5, %s1034_s3 }
  0x7f   :  { %p1039_p0 = por %p1038_p13, %p1037_p12 }
  0x81   :  { %p1040_p1 = pnand %p1039_p0, %p1035_p11 }
  0x83   :  { %1043 = shalt.err (!%p1040_p1)  }
  0x84   :  { %s1044_s6 = scalar_lea.vmem %s101_s30, 64  ;;  %p1049_p3 = scmp.lt.s32.totalorder %s101_s30, %s1573_s14 }
  0x85   :  { %p1045_p2 = scmp.ne.s32.totalorder %s101_s30, %s1044_s6  ;;  %p1050_p4 = scmp.lt.s32.totalorder %s1600_s9, %s1044_s6 }
  0x87   :  { %p1051_p5 = por %p1050_p4, %p1049_p3 }
  0x89   :  { %p1052_p7 = pnand %p1051_p5, %p1045_p2 }
  0x8b   :  { %1055 = shalt.err (!%p1052_p7)  }
  0x8c   :  { %103 = dma.hbm_to_vmem [thread:$0]  %s96_s29, 64, %s101_s30, [#allocation2 + $0x5], %s1536_s10, %s1536_s10, %s1537_s11 }
  0x8d   :  { %s774_s0 = sld [smem:[#allocation4 + $0x6]]  ;;  %s1541_s7 = smov [#allocation5 + $0x6]  }
  0x8e   :  { %s113_s8 = sshll.u32 %s1541_s7, 4  ;;  %s775_s17 = sld [smem:[#allocation4 + $0x7]]  ;;  %s1706_s8 = int_to_ptr.vmem [resolvable:$true] %s113_s8 }
  0x8f   :  { %s1542_s12 = smov [#allocation5 + $0x7]   ;;  %s1708_s16 = sld [smem:[#allocation4 + $0x8]] }
  0x90   :  { %s126_s15 = sshll.u32 %s1542_s12, 4  ;;  %s1543_s20 = smov [#allocation5 + $0x20]   ;;  %s1710_s15 = int_to_ptr.vmem [resolvable:$true] %s126_s15 }
  0x91   :  { %s1712_s21 = sshll.u32 %s1543_s20, 4  ;;  %s1714_s23 = sld [smem:[#allocation4 + $0x9]]  ;;  %s156_s21 = int_to_ptr.vmem [resolvable:$true] %s1712_s21 }
  0x93   :  { %s104_s24 = sshrl.u32 %s774_s0, 3  ;;  %s105_s22 = sand.u32 7, %s774_s0  }
  0x94   :  { %s788_s27 = sshll.u32 %s104_s24, 5  ;;  %s117_s13 = sshrl.u32 %s775_s17, 3 }
  0x95   :  { %s107_s19 = sadd.s32 %s788_s27, %s105_s22  ;;  %s118_s26 = sand.u32 7, %s775_s17  }
  0x96   :  { %s789_s30 = sshll.u32 %s107_s19, 4  ;;  %s790_s18 = sshll.u32 %s117_s13, 5 }
  0x97   :  { %s109_s3 = scalar_lea.hbm %s2242_s1, %s789_s30  ;;  %s120_s4 = sadd.s32 %s790_s18, %s118_s26 }
  0x98   :  { %s1056_s28 = scalar_lea.hbm %s109_s3, 64  ;;  %p1059_p9 = scmp.lt.s32.totalorder %s109_s3, %s2242_s1 }
  0x99   :  { %p1057_p8 = scmp.ne.s32.totalorder %s109_s3, %s1056_s28  ;;  %p1060_p10 = scmp.lt.s32.totalorder %s1591_s5, %s1056_s28 }
  0x9b   :  { %p1061_p11 = por %p1060_p10, %p1059_p9 }
  0x9d   :  { %p1062_p12 = pnand %p1061_p11, %p1057_p8 }
  0x9f   :  { %1065 = shalt.err (!%p1062_p12)  }
  0xa0   :  { %s1066_s0 = scalar_lea.vmem %s1706_s8, 64  ;;  %p1071_p0 = scmp.lt.s32.totalorder %s1706_s8, %s1573_s14 }
  0xa1   :  { %p1067_p13 = scmp.ne.s32.totalorder %s1706_s8, %s1066_s0  ;;  %p1072_p1 = scmp.lt.s32.totalorder %s1600_s9, %s1066_s0 }
  0xa3   :  { %p1073_p2 = por %p1072_p1, %p1071_p0 }
  0xa5   :  { %p1074_p3 = pnand %p1073_p2, %p1067_p13 }
  0xa7   :  { %1077 = shalt.err (!%p1074_p3)  }
  0xa8   :  { %116 = dma.hbm_to_vmem [thread:$0]  %s109_s3, 64, %s1706_s8, [#allocation2 + $0x6], %s1536_s10, %s1536_s10, %s1537_s11 }
  0xa9   :  { %s791_s17 = sshll.u32 %s120_s4, 4  ;;  %s146_s12 = sshrl.u32 %s1708_s16, 3 }
  0xaa   :  { %s122_s22 = scalar_lea.hbm %s2242_s1, %s791_s17  ;;  %s147_s27 = sand.u32 7, %s1708_s16  }
  0xab   :  { %s1078_s13 = scalar_lea.hbm %s122_s22, 64  ;;  %p1081_p5 = scmp.lt.s32.totalorder %s122_s22, %s2242_s1 }
  0xac   :  { %p1079_p4 = scmp.ne.s32.totalorder %s122_s22, %s1078_s13  ;;  %p1082_p7 = scmp.lt.s32.totalorder %s1591_s5, %s1078_s13 }
  0xae   :  { %p1083_p8 = por %p1082_p7, %p1081_p5 }
  0xb0   :  { %p1084_p9 = pnand %p1083_p8, %p1079_p4 }
  0xb2   :  { %1087 = shalt.err (!%p1084_p9)  }
  0xb3   :  { %s1088_s8 = scalar_lea.vmem %s1710_s15, 64  ;;  %p1093_p11 = scmp.lt.s32.totalorder %s1710_s15, %s1573_s14 }
  0xb4   :  { %p1089_p10 = scmp.ne.s32.totalorder %s1710_s15, %s1088_s8  ;;  %p1094_p12 = scmp.lt.s32.totalorder %s1600_s9, %s1088_s8 }
  0xb6   :  { %p1095_p13 = por %p1094_p12, %p1093_p11 }
  0xb8   :  { %p1096_p0 = pnand %p1095_p13, %p1089_p10 }
  0xba   :  { %1099 = shalt.err (!%p1096_p0)  }
  0xbb   :  { %129 = dma.hbm_to_vmem [thread:$0]  %s122_s22, 64, %s1710_s15, [#allocation2 + $0x7], %s1536_s10, %s1536_s10, %s1537_s11 }
  0xbc   :  { %s800_s16 = sshll.u32 %s146_s12, 5  ;;  %s159_s18 = sshrl.u32 %s1714_s23, 3 }
  0xbd   :  { %s149_s30 = sadd.s32 %s800_s16, %s147_s27  ;;  %s160_s29 = sand.u32 7, %s1714_s23  }
  0xbe   :  { %s801_s25 = sshll.u32 %s149_s30, 4  ;;  %s802_s6 = sshll.u32 %s159_s18, 5 }
  0xbf   :  { %s151_s28 = scalar_lea.hbm %s2242_s1, %s801_s25 }
  0xc0   :  { %s1100_s7 = scalar_lea.hbm %s151_s28, 64  ;;  %p1103_p2 = scmp.lt.s32.totalorder %s151_s28, %s2242_s1 }
  0xc1   :  { %p1101_p1 = scmp.ne.s32.totalorder %s151_s28, %s1100_s7  ;;  %p1104_p3 = scmp.lt.s32.totalorder %s1591_s5, %s1100_s7 }
  0xc3   :  { %p1105_p4 = por %p1104_p3, %p1103_p2 }
  0xc5   :  { %p1106_p5 = pnand %p1105_p4, %p1101_p1 }
  0xc7   :  { %1109 = shalt.err (!%p1106_p5)  }
  0xc8   :  { %s1110_s15 = scalar_lea.vmem %s156_s21, 64  ;;  %p1115_p8 = scmp.lt.s32.totalorder %s156_s21, %s1573_s14 }
  0xc9   :  { %p1111_p7 = scmp.ne.s32.totalorder %s156_s21, %s1110_s15  ;;  %p1116_p9 = scmp.lt.s32.totalorder %s1600_s9, %s1110_s15 }
  0xcb   :  { %p1117_p10 = por %p1116_p9, %p1115_p8 }
  0xcd   :  { %p1118_p11 = pnand %p1117_p10, %p1111_p7 }
  0xcf   :  { %1121 = shalt.err (!%p1118_p11)  }
  0xd0   :  { %158 = dma.hbm_to_vmem [thread:$0]  %s151_s28, 64, %s156_s21, [#allocation2 + $0x8], %s1536_s10, %s1536_s10, %s1537_s11 }
  0xd1   :  { %s162_s23 = sadd.s32 %s802_s6, %s160_s29  ;;  %s1544_s20 = smov [#allocation5 + $0x21]  }
  0xd2   :  { %s803_s12 = sshll.u32 %s162_s23, 4  ;;  %s168_s24 = sshll.u32 %s1544_s20, 4  ;;  %s169_s24 = int_to_ptr.vmem [resolvable:$true] %s168_s24 }
  0xd3   :  { %s164_s13 = scalar_lea.hbm %s2242_s1, %s803_s12 }
  0xd4   :  { %s1122_s19 = scalar_lea.hbm %s164_s13, 64  ;;  %p1125_p13 = scmp.lt.s32.totalorder %s164_s13, %s2242_s1 }
  0xd5   :  { %p1123_p12 = scmp.ne.s32.totalorder %s164_s13, %s1122_s19  ;;  %p1126_p0 = scmp.lt.s32.totalorder %s1591_s5, %s1122_s19 }
  0xd7   :  { %p1127_p1 = por %p1126_p0, %p1125_p13 }
  0xd9   :  { %p1128_p2 = pnand %p1127_p1, %p1123_p12 }
  0xdb   :  { %1131 = shalt.err (!%p1128_p2)  }
  0xdc   :  { %s1132_s21 = scalar_lea.vmem %s169_s24, 64  ;;  %p1137_p4 = scmp.lt.s32.totalorder %s169_s24, %s1573_s14 }
  0xdd   :  { %p1133_p3 = scmp.ne.s32.totalorder %s169_s24, %s1132_s21  ;;  %p1138_p5 = scmp.lt.s32.totalorder %s1600_s9, %s1132_s21 }
  0xdf   :  { %p1139_p7 = por %p1138_p5, %p1137_p4 }
  0xe1   :  { %p1140_p8 = pnand %p1139_p7, %p1133_p3 }
  0xe3   :  { %1143 = shalt.err (!%p1140_p8)  }
  0xe4   :  { %171 = dma.hbm_to_vmem [thread:$0]  %s164_s13, 64, %s169_s24, [#allocation2 + $0x9], %s1536_s10, %s1536_s10, %s1537_s11 }
  0xe5   :  { %s794_s16 = sld [smem:[#allocation4 + $0xa]]  ;;  %s1545_s30 = smov [#allocation5 + $0x22]  }
  0xe6   :  { %s181_s18 = sshll.u32 %s1545_s30, 4  ;;  %s795_s25 = sld [smem:[#allocation4 + $0xb]]  ;;  %s1777_s18 = int_to_ptr.vmem [resolvable:$true] %s181_s18 }
  0xe7   :  { %s1546_s29 = smov [#allocation5 + $0x23]   ;;  %s1779_s4 = sld [smem:[#allocation4 + $0xc]] }
  0xe8   :  { %s194_s3 = sshll.u32 %s1546_s29, 4  ;;  %s1547_s28 = smov [#allocation5 + $0x24]   ;;  %s1781_s3 = int_to_ptr.vmem [resolvable:$true] %s194_s3 }
  0xe9   :  { %s1783_s6 = sshll.u32 %s1547_s28, 4  ;;  %s1785_s7 = sld [smem:[#allocation4 + $0xd]]  ;;  %s208_s6 = int_to_ptr.vmem [resolvable:$true] %s1783_s6 }
  0xeb   :  { %s172_s0 = sshrl.u32 %s794_s16, 3  ;;  %s173_s17 = sand.u32 7, %s794_s16  }
  0xec   :  { %s804_s15 = sshll.u32 %s172_s0, 5  ;;  %s185_s23 = sshrl.u32 %s795_s25, 3 }
  0xed   :  { %s175_s12 = sadd.s32 %s804_s15, %s173_s17  ;;  %s186_s20 = sand.u32 7, %s795_s25  }
  0xee   :  { %s805_s24 = sshll.u32 %s175_s12, 4  ;;  %s806_s22 = sshll.u32 %s185_s23, 5 }
  0xef   :  { %s177_s19 = scalar_lea.hbm %s2242_s1, %s805_s24  ;;  %s188_s26 = sadd.s32 %s806_s22, %s186_s20 }
  0xf0   :  { %s1144_s8 = scalar_lea.hbm %s177_s19, 64  ;;  %p1147_p10 = scmp.lt.s32.totalorder %s177_s19, %s2242_s1 }
  0xf1   :  { %p1145_p9 = scmp.ne.s32.totalorder %s177_s19, %s1144_s8  ;;  %p1148_p11 = scmp.lt.s32.totalorder %s1591_s5, %s1144_s8 }
  0xf3   :  { %p1149_p12 = por %p1148_p11, %p1147_p10 }
  0xf5   :  { %p1150_p13 = pnand %p1149_p12, %p1145_p9 }
  0xf7   :  { %1153 = shalt.err (!%p1150_p13)  }
  0xf8   :  { %s1154_s16 = scalar_lea.vmem %s1777_s18, 64  ;;  %p1159_p1 = scmp.lt.s32.totalorder %s1777_s18, %s1573_s14 }
  0xf9   :  { %p1155_p0 = scmp.ne.s32.totalorder %s1777_s18, %s1154_s16  ;;  %p1160_p2 = scmp.lt.s32.totalorder %s1600_s9, %s1154_s16 }
  0xfb   :  { %p1161_p3 = por %p1160_p2, %p1159_p1 }
  0xfd   :  { %p1162_p4 = pnand %p1161_p3, %p1155_p0 }
  0xff   :  { %1165 = shalt.err (!%p1162_p4)  }
 0x100   :  { %184 = dma.hbm_to_vmem [thread:$0]  %s177_s19, 64, %s1777_s18, [#allocation2 + $0xa], %s1536_s10, %s1536_s10, %s1537_s11 }
 0x101   :  { %s807_s25 = sshll.u32 %s188_s26, 4  ;;  %s198_s29 = sshrl.u32 %s1779_s4, 3 }
 0x102   :  { %s190_s17 = scalar_lea.hbm %s2242_s1, %s807_s25  ;;  %s199_s15 = sand.u32 7, %s1779_s4  }
 0x103   :  { %s1166_s23 = scalar_lea.hbm %s190_s17, 64  ;;  %p1169_p7 = scmp.lt.s32.totalorder %s190_s17, %s2242_s1 }
 0x104   :  { %p1167_p5 = scmp.ne.s32.totalorder %s190_s17, %s1166_s23  ;;  %p1170_p8 = scmp.lt.s32.totalorder %s1591_s5, %s1166_s23 }
 0x106   :  { %p1171_p9 = por %p1170_p8, %p1169_p7 }
 0x108   :  { %p1172_p10 = pnand %p1171_p9, %p1167_p5 }
 0x10a   :  { %1175 = shalt.err (!%p1172_p10)  }
 0x10b   :  { %s1176_s18 = scalar_lea.vmem %s1781_s3, 64  ;;  %p1181_p12 = scmp.lt.s32.totalorder %s1781_s3, %s1573_s14 }
 0x10c   :  { %p1177_p11 = scmp.ne.s32.totalorder %s1781_s3, %s1176_s18  ;;  %p1182_p13 = scmp.lt.s32.totalorder %s1600_s9, %s1176_s18 }
 0x10e   :  { %p1183_p0 = por %p1182_p13, %p1181_p12 }
 0x110   :  { %p1184_p1 = pnand %p1183_p0, %p1177_p11 }
 0x112   :  { %1187 = shalt.err (!%p1184_p1)  }
 0x113   :  { %197 = dma.hbm_to_vmem [thread:$0]  %s190_s17, 64, %s1781_s3, [#allocation2 + $0xb], %s1536_s10, %s1536_s10, %s1537_s11 }
 0x114   :  { %s808_s4 = sshll.u32 %s198_s29, 5  ;;  %s211_s22 = sshrl.u32 %s1785_s7, 3 }
 0x115   :  { %s201_s24 = sadd.s32 %s808_s4, %s199_s15  ;;  %s212_s13 = sand.u32 7, %s1785_s7  }
 0x116   :  { %s809_s27 = sshll.u32 %s201_s24, 4  ;;  %s810_s21 = sshll.u32 %s211_s22, 5 }
 0x117   :  { %s203_s8 = scalar_lea.hbm %s2242_s1, %s809_s27 }
 0x118   :  { %s1188_s30 = scalar_lea.hbm %s203_s8, 64  ;;  %p1191_p3 = scmp.lt.s32.totalorder %s203_s8, %s2242_s1 }
 0x119   :  { %p1189_p2 = scmp.ne.s32.totalorder %s203_s8, %s1188_s30  ;;  %p1192_p4 = scmp.lt.s32.totalorder %s1591_s5, %s1188_s30 }
 0x11b   :  { %p1193_p5 = por %p1192_p4, %p1191_p3 }
 0x11d   :  { %p1194_p7 = pnand %p1193_p5, %p1189_p2 }
 0x11f   :  { %1197 = shalt.err (!%p1194_p7)  }
 0x120   :  { %s1198_s3 = scalar_lea.vmem %s208_s6, 64  ;;  %p1203_p9 = scmp.lt.s32.totalorder %s208_s6, %s1573_s14 }
 0x121   :  { %p1199_p8 = scmp.ne.s32.totalorder %s208_s6, %s1198_s3  ;;  %p1204_p10 = scmp.lt.s32.totalorder %s1600_s9, %s1198_s3 }
 0x123   :  { %p1205_p11 = por %p1204_p10, %p1203_p9 }
 0x125   :  { %p1206_p12 = pnand %p1205_p11, %p1199_p8 }
 0x127   :  { %1209 = shalt.err (!%p1206_p12)  }
 0x128   :  { %210 = dma.hbm_to_vmem [thread:$0]  %s203_s8, 64, %s208_s6, [#allocation2 + $0xc], %s1536_s10, %s1536_s10, %s1537_s11 }
 0x129   :  { %s214_s7 = sadd.s32 %s810_s21, %s212_s13  ;;  %s1548_s28 = smov [#allocation5 + $0x25]  }
 0x12a   :  { %s811_s29 = sshll.u32 %s214_s7, 4  ;;  %s220_s0 = sshll.u32 %s1548_s28, 4  ;;  %s221_s0 = int_to_ptr.vmem [resolvable:$true] %s220_s0 }
 0x12b   :  { %s216_s23 = scalar_lea.hbm %s2242_s1, %s811_s29 }
 0x12c   :  { %s1210_s12 = scalar_lea.hbm %s216_s23, 64  ;;  %p1213_p0 = scmp.lt.s32.totalorder %s216_s23, %s2242_s1 }
 0x12d   :  { %p1211_p13 = scmp.ne.s32.totalorder %s216_s23, %s1210_s12  ;;  %p1214_p1 = scmp.lt.s32.totalorder %s1591_s5, %s1210_s12 }
 0x12f   :  { %p1215_p2 = por %p1214_p1, %p1213_p0 }
 0x131   :  { %p1216_p3 = pnand %p1215_p2, %p1211_p13 }
 0x133   :  { %1219 = shalt.err (!%p1216_p3)  }
 0x134   :  { %s1220_s6 = scalar_lea.vmem %s221_s0, 64  ;;  %p1225_p5 = scmp.lt.s32.totalorder %s221_s0, %s1573_s14 }
 0x135   :  { %p1221_p4 = scmp.ne.s32.totalorder %s221_s0, %s1220_s6  ;;  %p1226_p7 = scmp.lt.s32.totalorder %s1600_s9, %s1220_s6 }
 0x137   :  { %p1227_p8 = por %p1226_p7, %p1225_p5 }
 0x139   :  { %p1228_p9 = pnand %p1227_p8, %p1221_p4 }
 0x13b   :  { %1231 = shalt.err (!%p1228_p9)  }
 0x13c   :  { %223 = dma.hbm_to_vmem [thread:$0]  %s216_s23, 64, %s221_s0, [#allocation2 + $0xd], %s1536_s10, %s1536_s10, %s1537_s11 }
 0x13d   :  { %s798_s4 = sld [smem:[#allocation4 + $0xe]]  ;;  %s1549_s22 = smov [#allocation5 + $0x26]  }
 0x13e   :  { %s799_s24 = sld [smem:[#allocation4 + $0xf]]  ;;  %s233_s27 = sshll.u32 %s1549_s22, 4  ;;  %s1848_s27 = int_to_ptr.vmem [resolvable:$true] %s233_s27 }
 0x13f   :  { %s1550_s13 = smov [#allocation5 + $0x27]  }
 0x140   :  { %s246_s19 = sshll.u32 %s1550_s13, 4  ;;  %s1850_s19 = int_to_ptr.vmem [resolvable:$true] %s246_s19 }
 0x143   :  { %s224_s26 = sshrl.u32 %s798_s4, 3  ;;  %s225_s8 = sand.u32 7, %s798_s4  }
 0x144   :  { %s812_s21 = sshll.u32 %s224_s26, 5  ;;  %s237_s30 = sshrl.u32 %s799_s24, 3 }
 0x145   :  { %s227_s16 = sadd.s32 %s812_s21, %s225_s8  ;;  %s238_s25 = sand.u32 7, %s799_s24  }
 0x146   :  { %s813_s3 = sshll.u32 %s227_s16, 4  ;;  %s814_s7 = sshll.u32 %s237_s30, 5 }
 0x147   :  { %s229_s0 = scalar_lea.hbm %s2242_s1, %s813_s3  ;;  %s240_s17 = sadd.s32 %s814_s7, %s238_s25 }
 0x148   :  { %s1232_s15 = scalar_lea.hbm %s229_s0, 64  ;;  %p1235_p11 = scmp.lt.s32.totalorder %s229_s0, %s2242_s1 }
 0x149   :  { %p1233_p10 = scmp.ne.s32.totalorder %s229_s0, %s1232_s15  ;;  %p1236_p12 = scmp.lt.s32.totalorder %s1591_s5, %s1232_s15 }
 0x14b   :  { %p1237_p13 = por %p1236_p12, %p1235_p11 }
 0x14d   :  { %p1238_p0 = pnand %p1237_p13, %p1233_p10 }
 0x14f   :  { %1241 = shalt.err (!%p1238_p0)  }
 0x150   :  { %s1242_s20 = scalar_lea.vmem %s1848_s27, 64  ;;  %p1247_p2 = scmp.lt.s32.totalorder %s1848_s27, %s1573_s14 }
 0x151   :  { %p1243_p1 = scmp.ne.s32.totalorder %s1848_s27, %s1242_s20  ;;  %p1248_p3 = scmp.lt.s32.totalorder %s1600_s9, %s1242_s20 }
 0x153   :  { %p1249_p4 = por %p1248_p3, %p1247_p2 }
 0x155   :  { %p1250_p5 = pnand %p1249_p4, %p1243_p1 }
 0x157   :  { %1253 = shalt.err (!%p1250_p5)  }
 0x158   :  { %236 = dma.hbm_to_vmem [thread:$0]  %s229_s0, 64, %s1848_s27, [#allocation2 + $0xe], %s1536_s10, %s1536_s10, %s1537_s11 }
 0x159   :  { %s815_s18 = sshll.u32 %s240_s17, 4 }
 0x15a   :  { %s242_s24 = scalar_lea.hbm %s2242_s1, %s815_s18 }
 0x15b   :  { %s1254_s22 = scalar_lea.hbm %s242_s24, 64  ;;  %p1257_p8 = scmp.lt.s32.totalorder %s242_s24, %s2242_s1 }
 0x15c   :  { %p1255_p7 = scmp.ne.s32.totalorder %s242_s24, %s1254_s22  ;;  %p1258_p9 = scmp.lt.s32.totalorder %s1591_s5, %s1254_s22 }
 0x15e   :  { %p1259_p10 = por %p1258_p9, %p1257_p8 }
 0x160   :  { %p1260_p11 = pnand %p1259_p10, %p1255_p7 }
 0x162   :  { %1263 = shalt.err (!%p1260_p11)  }
 0x163   :  { %s1264_s27 = scalar_lea.vmem %s1850_s19, 64  ;;  %p1269_p13 = scmp.lt.s32.totalorder %s1850_s19, %s1573_s14 }
 0x164   :  { %p1265_p12 = scmp.ne.s32.totalorder %s1850_s19, %s1264_s27  ;;  %p1270_p0 = scmp.lt.s32.totalorder %s1600_s9, %s1264_s27 }
 0x166   :  { %p1271_p1 = por %p1270_p0, %p1269_p13 }
 0x168   :  { %p1272_p2 = pnand %p1271_p1, %p1265_p12 }
 0x16a   :  { %1275 = shalt.err (!%p1272_p2)  }
 0x16b   :  { %249 = dma.hbm_to_vmem [thread:$0]  %s242_s24, 64, %s1850_s19, [#allocation2 + $0xf], %s1536_s10, %s1536_s10, %s1537_s11 }
 0x16c   :  { %s1884_s8 = smov 0  }
 0x16d LB: > { %2265 = sst [smem:[#allocation41_spill]] %s1530_s8  ;;  %p256_p3 = scmp.lt.s32.totalorder %s1530_s8, 0  ;;  %s1530_s8 = sphi %s1884_s8, %s255_s8  }
 0x16e   : > { %s257_s21 = ssub.s32 0, %s1530_s8  ;;  %s268_s16 = sadd.s32 2, %s1530_s8 }
 0x16f   : > { %s816_s30 = smin.u32 %s1530_s8, %s257_s21  ;;  %s2244_s3 = sshll.u32 %s1530_s8, 3 }
 0x170   : > { %s259_s25 = sand.u32 1, %s816_s30   ;;  %s1896_s11 = sadd.s32 16, %s2244_s3 }
 0x171   : > { %s260_s10 = ssub.s32 0, %s259_s25  ;;  %p271_p4 = scmp.lt.s32.totalorder %s1896_s11, 15 }
 0x172   : > { %s2297_s10 = smov (!%p256_p3, %s260_s10), %s259_s25  ;;  %s1900_s19 = sadd.s32 1, %s1896_s11 }
 0x173   : > { %p818_p5 = scmp.lt.s32.totalorder %s2297_s10, 0  ;;  %s266_s7 = sadd.s32 2, %s2297_s10 }
 0x174   : > { %s272_s29 = scalar_select %p271_p4, %s1896_s11, 15 }
 0x175   : > { %s2299_s7 = smov (!%p818_p5, %s266_s7), %s2297_s10  ;;  %p275_p7 = scmp.lt.s32.totalorder %s1900_s19, 15 }
 0x176   : > { %s1905_s28 = sld [smem:[#allocation4 + %s272_s29]]  ;;  %s1909_s0 = sadd.s32 2, %s1896_s11 }
 0x177   : > { %s1912_s17 = sadd.s32 3, %s1896_s11  ;;  %p279_p8 = scmp.lt.s32.totalorder %s1909_s0, 15 }
 0x178   : > { %s276_s15 = scalar_select %p275_p7, %s1900_s19, 15 }
 0x179   : > { %p283_p9 = scmp.lt.s32.totalorder %s1912_s17, 15  ;;  %s1920_s12 = sadd.s32 4, %s1896_s11 }
 0x17a   : > { %s1917_s23 = sld [smem:[#allocation4 + %s276_s15]]  ;;  %p287_p10 = scmp.lt.s32.totalorder %s1920_s12, 15 }
 0x17b   : > { %2266 = sst [smem:[#allocation42_spill]] %s1920_s12  ;;  %s1930_s24 = sadd.s32 5, %s1896_s11 }
 0x17c   : > { %s280_s20 = scalar_select %p279_p8, %s1909_s0, 15 }
 0x17d   : > { %s284_s18 = scalar_select %p283_p9, %s1912_s17, 15 }
 0x17e   : > { %s1924_s6 = sld [smem:[#allocation4 + %s280_s20]]  ;;  %p291_p11 = scmp.lt.s32.totalorder %s1930_s24, 15 }
 0x17f   : > { %s1927_s4 = sld [smem:[#allocation4 + %s284_s18]]  ;;  %s1935_s13 = sadd.s32 6, %s1896_s11 }
 0x180   : > { %2267 = sst [smem:[#allocation43_spill]] %s1930_s24  ;;  %p295_p12 = scmp.lt.s32.totalorder %s1935_s13, 15 }
 0x181   : > { %s288_s22 = scalar_select %p287_p10, %s1920_s12, 15 }
 0x182   : > { %2268 = sst [smem:[#allocation44_spill]] %s1935_s13  ;;  %s1945_s25 = sadd.s32 7, %s1896_s11 }
 0x183   : > { %s1937_s26 = sld [smem:[#allocation4 + %s288_s22]]  ;;  %p299_p13 = scmp.lt.s32.totalorder %s1945_s25, 15 }
 0x184   : > { %s292_s27 = scalar_select %p291_p11, %s1930_s24, 15 }
 0x185   : > { %s296_s21 = scalar_select %p295_p12, %s1935_s13, 15 }
 0x186   : > { %s1942_s30 = sld [smem:[#allocation4 + %s292_s27]]  ;;  %s821_s29 = sshll.u32 %s2299_s7, 3 }
 0x187   : > { %2271 = sst [smem:[#allocation47_spill]] %s1945_s25  ;;  %s1954_s18 = scalar_lea.sflag [#allocation2], %s821_s29 }
 0x188   : > { %s1947_s10 = sld [smem:[#allocation4 + %s296_s21]] }
 0x189   : > { %2269 = sst [smem:[#allocation45_spill]] %s1937_s26 }
 0x18a   : > { %s300_s15 = scalar_select %p299_p13, %s1945_s25, 15 }
 0x18c   : > { %2270 = sst [smem:[#allocation46_spill]] %s1942_s30 }
 0x18d   : > { %s1952_s20 = sld [smem:[#allocation4 + %s300_s15]] }
 0x18e   : > { %2272 = sst [smem:[#allocation48_spill]] %s1947_s10 }
 0x193   : > { %2273 = sst [smem:[#allocation49_spill]] %s1952_s20 }
 0x194   : > { %1510 = dma.done.wait %s1954_s18, 64 }
 0x195   : > { %1511 = vsyncadd %s1954_s18, 4294967232  ;;  %s1959_s22 = scalar_lea.sflag %s1954_s18, 1 [#allocation2] }
 0x196   : > { %1512 = dma.done.wait %s1959_s22, 64 }
 0x197   : > { %1513 = vsyncadd %s1959_s22, 4294967232  ;;  %s1964_s27 = scalar_lea.sflag %s1954_s18, 2 [#allocation2] }
 0x198   : > { %1514 = dma.done.wait %s1964_s27, 64 }
 0x199   : > { %1515 = vsyncadd %s1964_s27, 4294967232  ;;  %s1969_s7 = scalar_lea.sflag %s1954_s18, 3 [#allocation2] }
 0x19a   : > { %2274 = sst [smem:[#allocation50_spill]] %s1969_s7 }
 0x19b   : > { %1516 = dma.done.wait %s1969_s7, 64 }
 0x19c   : > { %1517 = vsyncadd %s1969_s7, 4294967232  ;;  %s1974_s21 = scalar_lea.sflag %s1954_s18, 4 [#allocation2] }
 0x19d   : > { %2275 = sst [smem:[#allocation51_spill]] %s1974_s21 }
 0x19e   : > { %1518 = dma.done.wait %s1974_s21, 64 }
 0x19f   : > { %1519 = vsyncadd %s1974_s21, 4294967232  ;;  %s1979_s29 = scalar_lea.sflag %s1954_s18, 5 [#allocation2] }
 0x1a0   : > { %2276 = sst [smem:[#allocation52_spill]] %s1979_s29 }
 0x1a1   : > { %1520 = dma.done.wait %s1979_s29, 64 }
 0x1a2   : > { %1521 = vsyncadd %s1979_s29, 4294967232  ;;  %s1984_s15 = scalar_lea.sflag %s1954_s18, 6 [#allocation2] }
 0x1a3   : > { %2277 = sst [smem:[#allocation53_spill]] %s1984_s15 }
 0x1a4   : > { %1522 = dma.done.wait %s1984_s15, 64 }
 0x1a5   : > { %1523 = vsyncadd %s1984_s15, 4294967232  ;;  %s1989_s3 = scalar_lea.sflag %s1954_s18, 7 [#allocation2] }
 0x1a6   : > { %2278 = sst [smem:[#allocation54_spill]] %s1989_s3 }
 0x1a7   : > { %1524 = dma.done.wait %s1989_s3, 64 }
 0x1a8   : > { %1525 = vsyncadd %s1989_s3, 4294967232  ;;  %p1995_p0 = scmp.lt.s32.totalorder %s268_s16, 2  ;;  %s340_s25 = sshrl.u32 %s1905_s28, 3 }
 0x1a9   : > { %s341_s15 = sand.u32 7, %s1905_s28   ;;  %s830_s20 = sshll.u32 %s340_s25, 5 }
 0x1aa   : > { %s346_s13 = sshrl.u32 %s1896_s11, 3  ;;  %s343_s29 = sadd.s32 %s830_s20, %s341_s15 }
 0x1ab   : > { %s347_s10 = sand.u32 7, %s1896_s11   ;;  %s831_s3 = sshll.u32 %s343_s29, 4 }
 0x1ac   : > { %s832_s24 = sshll.u32 %s346_s13, 5  ;;  %s2006_s30 = scalar_lea.hbm %s2242_s1, %s831_s3 }
 0x1ad   : > { %s349_s16 = sadd.s32 %s832_s24, %s347_s10  ;;  %s357_s28 = sshrl.u32 %s1917_s23, 3 }
 0x1ae   : > { %s350_s12 = scalar_lea.vmem [#allocation5], %s349_s16  ;;  %s1276_s25 = scalar_lea.hbm %s2006_s30, 64 }
 0x1af   : > { %s352_s7 = sshll.u32 %s350_s12, 4  ;;  %p1277_p1 = scmp.ne.s32.totalorder %s2006_s30, %s1276_s25  ;;  %s353_s7 = int_to_ptr.vmem [resolvable:$true] %s352_s7 }
 0x1b0   : > { %p1281_p4 = scmp.lt.s32.totalorder %s2006_s30, %s2242_s1  ;;  %p1282_p5 = scmp.lt.s32.totalorder %s1591_s5, %s1276_s25 }
 0x1b1   : > { %p1278_p2 = pnand %p1277_p1, %p1995_p0 }
 0x1b2   : > { %p1283_p7 = por %p1282_p5, %p1281_p4 }
 0x1b3   : > { %p1279_p3 = pneg %p1278_p2 }
 0x1b5   : > { %p1284_p8 = pnand %p1283_p7, %p1279_p3 }
 0x1b7   : > { %1287 = shalt.err (!%p1284_p8)  }
 0x1b8   : > { %s1288_s8 = scalar_lea.vmem %s353_s7, 64  ;;  %p1295_p12 = scmp.lt.s32.totalorder %s353_s7, %s1573_s14 }
 0x1b9   : > { %p1289_p9 = scmp.ne.s32.totalorder %s353_s7, %s1288_s8  ;;  %p1296_p13 = scmp.lt.s32.totalorder %s1600_s9, %s1288_s8 }
 0x1bb   : > { %p1290_p10 = pnand %p1289_p9, %p1995_p0  ;;  %p1297_p1 = por %p1296_p13, %p1295_p12 }
 0x1bd   : > { %p1291_p11 = pneg %p1290_p10 }
 0x1bf   : > { %p1298_p2 = pnand %p1297_p1, %p1291_p11 }
 0x1c1   : > { %1301 = shalt.err (!%p1298_p2)  }
 0x1c2   : > { %s1551_s3 = smov 128   ;;  %s1552_s12 = smov 1  }
 0x1c3   : > { %876 = dma.hbm_to_vmem [thread:$0]  (%p1995_p0), %s2006_s30, 64, %s353_s7, %s1954_s18, %s1551_s3, %s1551_s3, %s1552_s12 }
 0x1c4   : > { %s358_s24 = sand.u32 7, %s1917_s23   ;;  %s833_s10 = sshll.u32 %s357_s28, 5 }
 0x1c5   : > { %s360_s20 = sadd.s32 %s833_s10, %s358_s24  ;;  %s363_s21 = sshrl.u32 %s1900_s19, 3 }
 0x1c6   : > { %s834_s29 = sshll.u32 %s360_s20, 4  ;;  %s364_s15 = sand.u32 7, %s1900_s19  }
 0x1c7   : > { %s2035_s11 = scalar_lea.hbm %s2242_s1, %s834_s29  ;;  %s835_s13 = sshll.u32 %s363_s21, 5 }
 0x1c8   : > { %s366_s8 = sadd.s32 %s835_s13, %s364_s15  ;;  %s374_s26 = sshrl.u32 %s1924_s6, 3 }
 0x1c9   : > { %s375_s30 = sand.u32 7, %s1924_s6   ;;  %s367_s23 = scalar_lea.vmem [#allocation5], %s366_s8 }
 0x1ca   : > { %s369_s18 = sshll.u32 %s367_s23, 4  ;;  %s836_s7 = sshll.u32 %s374_s26, 5  ;;  %s370_s18 = int_to_ptr.vmem [resolvable:$true] %s369_s18 }
 0x1cb   : > { %s377_s28 = sadd.s32 %s836_s7, %s375_s30  ;;  %s1302_s24 = scalar_lea.hbm %s2035_s11, 64 }
 0x1cc   : > { %p1303_p3 = scmp.ne.s32.totalorder %s2035_s11, %s1302_s24  ;;  %p1307_p7 = scmp.lt.s32.totalorder %s2035_s11, %s2242_s1 }
 0x1cd   : > { %p1308_p8 = scmp.lt.s32.totalorder %s1591_s5, %s1302_s24 }
 0x1ce   : > { %p1304_p4 = pnand %p1303_p3, %p1995_p0 }
 0x1cf   : > { %p1309_p9 = por %p1308_p8, %p1307_p7 }
 0x1d0   : > { %p1305_p5 = pneg %p1304_p4 }
 0x1d2   : > { %p1310_p10 = pnand %p1309_p9, %p1305_p5 }
 0x1d4   : > { %1313 = shalt.err (!%p1310_p10)  }
 0x1d5   : > { %s1314_s20 = scalar_lea.vmem %s370_s18, 64  ;;  %p1321_p1 = scmp.lt.s32.totalorder %s370_s18, %s1573_s14 }
 0x1d6   : > { %p1315_p11 = scmp.ne.s32.totalorder %s370_s18, %s1314_s20  ;;  %p1322_p2 = scmp.lt.s32.totalorder %s1600_s9, %s1314_s20 }
 0x1d8   : > { %p1316_p12 = pnand %p1315_p11, %p1995_p0  ;;  %p1323_p3 = por %p1322_p2, %p1321_p1 }
 0x1da   : > { %p1317_p13 = pneg %p1316_p12 }
 0x1dc   : > { %p1324_p4 = pnand %p1323_p3, %p1317_p13 }
 0x1de   : > { %1327 = shalt.err (!%p1324_p4)  }
 0x1df   : > { %877 = dma.hbm_to_vmem [thread:$0]  (%p1995_p0), %s2035_s11, 64, %s370_s18, %s1959_s22, %s1551_s3, %s1551_s3, %s1552_s12 }
 0x1e0   : > { %s837_s6 = sshll.u32 %s377_s28, 4  ;;  %s380_s26 = sshrl.u32 %s1909_s0, 3 }
 0x1e1   : > { %s2063_s15 = scalar_lea.hbm %s2242_s1, %s837_s6  ;;  %s381_s16 = sand.u32 7, %s1909_s0  }
 0x1e2   : > { %s838_s25 = sshll.u32 %s380_s26, 5  ;;  %s391_s13 = sshrl.u32 %s1927_s4, 3 }
 0x1e3   : > { %s383_s8 = sadd.s32 %s838_s25, %s381_s16  ;;  %s392_s30 = sand.u32 7, %s1927_s4  }
 0x1e4   : > { %s839_s23 = sshll.u32 %s391_s13, 5  ;;  %s384_s7 = scalar_lea.vmem [#allocation5], %s383_s8 }
 0x1e5   : > { %s386_s22 = sshll.u32 %s384_s7, 4  ;;  %s394_s11 = sadd.s32 %s839_s23, %s392_s30  ;;  %s387_s22 = int_to_ptr.vmem [resolvable:$true] %s386_s22 }
 0x1e6   : > { %s840_s18 = sshll.u32 %s394_s11, 4  ;;  %s1328_s28 = scalar_lea.hbm %s2063_s15, 64 }
 0x1e7   : > { %p1329_p5 = scmp.ne.s32.totalorder %s2063_s15, %s1328_s28  ;;  %p1333_p9 = scmp.lt.s32.totalorder %s2063_s15, %s2242_s1 }
 0x1e8   : > { %p1334_p10 = scmp.lt.s32.totalorder %s1591_s5, %s1328_s28 }
 0x1e9   : > { %p1330_p7 = pnand %p1329_p5, %p1995_p0 }
 0x1ea   : > { %p1335_p11 = por %p1334_p10, %p1333_p9 }
 0x1eb   : > { %p1331_p8 = pneg %p1330_p7 }
 0x1ed   : > { %p1336_p12 = pnand %p1335_p11, %p1331_p8 }
 0x1ef   : > { %1339 = shalt.err (!%p1336_p12)  }
 0x1f0   : > { %s1340_s0 = scalar_lea.vmem %s387_s22, 64  ;;  %p1347_p3 = scmp.lt.s32.totalorder %s387_s22, %s1573_s14 }
 0x1f1   : > { %p1341_p13 = scmp.ne.s32.totalorder %s387_s22, %s1340_s0  ;;  %p1348_p4 = scmp.lt.s32.totalorder %s1600_s9, %s1340_s0 }
 0x1f3   : > { %p1342_p1 = pnand %p1341_p13, %p1995_p0  ;;  %p1349_p5 = por %p1348_p4, %p1347_p3 }
 0x1f5   : > { %p1343_p2 = pneg %p1342_p1 }
 0x1f7   : > { %p1350_p7 = pnand %p1349_p5, %p1343_p2 }
 0x1f9   : > { %1353 = shalt.err (!%p1350_p7)  }
 0x1fa   : > { %s2280_s4 = sld [smem:[#allocation45_spill]]  ;;  %s2091_s6 = scalar_lea.hbm %s2242_s1, %s840_s18 }
 0x1fb   : > { %878 = dma.hbm_to_vmem [thread:$0]  (%p1995_p0), %s2063_s15, 64, %s387_s22, %s1964_s27, %s1551_s3, %s1551_s3, %s1552_s12 }
 0x1fc   : > { %s397_s26 = sshrl.u32 %s1912_s17, 3  ;;  %s398_s21 = sand.u32 7, %s1912_s17  }
 0x1fd   : > { %s841_s29 = sshll.u32 %s397_s26, 5  ;;  %s1354_s15 = scalar_lea.hbm %s2091_s6, 64 }
 0x1fe   : > { %s400_s16 = sadd.s32 %s841_s29, %s398_s21  ;;  %p1355_p8 = scmp.ne.s32.totalorder %s2091_s6, %s1354_s15 }
 0x1ff   : > { %s401_s8 = scalar_lea.vmem [#allocation5], %s400_s16  ;;  %p1359_p11 = scmp.lt.s32.totalorder %s2091_s6, %s2242_s1 }
 0x200   : > { %s408_s25 = sshrl.u32 %s2280_s4, 3  ;;  %s409_s13 = sand.u32 7, %s2280_s4  }
 0x201   : > { %s403_s30 = sshll.u32 %s401_s8, 4  ;;  %s842_s23 = sshll.u32 %s408_s25, 5  ;;  %s404_s30 = int_to_ptr.vmem [resolvable:$true] %s403_s30 }
 0x202   : > { %s411_s27 = sadd.s32 %s842_s23, %s409_s13  ;;  %p1356_p9 = pnand %p1355_p8, %p1995_p0 }
 0x203   : > { %p1360_p12 = scmp.lt.s32.totalorder %s1591_s5, %s1354_s15 }
 0x204   : > { %p1357_p10 = pneg %p1356_p9 }
 0x205   : > { %p1361_p13 = por %p1360_p12, %p1359_p11 }
 0x207   : > { %p1362_p1 = pnand %p1361_p13, %p1357_p10 }
 0x209   : > { %1365 = shalt.err (!%p1362_p1)  }
 0x20a   : > { %s1366_s17 = scalar_lea.vmem %s404_s30, 64  ;;  %p1373_p5 = scmp.lt.s32.totalorder %s404_s30, %s1573_s14 }
 0x20b   : > { %p1367_p2 = scmp.ne.s32.totalorder %s404_s30, %s1366_s17  ;;  %p1374_p7 = scmp.lt.s32.totalorder %s1600_s9, %s1366_s17 }
 0x20d   : > { %p1368_p3 = pnand %p1367_p2, %p1995_p0  ;;  %p1375_p8 = por %p1374_p7, %p1373_p5 }
 0x20f   : > { %p1369_p4 = pneg %p1368_p3 }
 0x211   : > { %p1376_p9 = pnand %p1375_p8, %p1369_p4 }
 0x213   : > { %1379 = shalt.err (!%p1376_p9)  }
 0x214   : > { %s2281_s11 = sld [smem:[#allocation50_spill]]  ;;  %s843_s24 = sshll.u32 %s411_s27, 4 }
 0x215   : > { %s2282_s18 = sld [smem:[#allocation42_spill]]  ;;  %s2121_s10 = scalar_lea.hbm %s2242_s1, %s843_s24 }
 0x216   : > { %s2283_s28 = sld [smem:[#allocation46_spill]]  ;;  %s1380_s23 = scalar_lea.hbm %s2121_s10, 64 }
 0x217   : > { %p1381_p10 = scmp.ne.s32.totalorder %s2121_s10, %s1380_s23  ;;  %p1385_p13 = scmp.lt.s32.totalorder %s2121_s10, %s2242_s1 }
 0x218   : > { %p1386_p1 = scmp.lt.s32.totalorder %s1591_s5, %s1380_s23 }
 0x219   : > { %p1382_p11 = pnand %p1381_p10, %p1995_p0 }
 0x21a   : > { %879 = dma.hbm_to_vmem [thread:$0]  (%p1995_p0), %s2091_s6, 64, %s404_s30, %s2281_s11, %s1551_s3, %s1551_s3, %s1552_s12 }
 0x21b   : > { %s414_s19 = sshrl.u32 %s2282_s18, 3  ;;  %s415_s20 = sand.u32 7, %s2282_s18  }
 0x21c   : > { %s844_s26 = sshll.u32 %s414_s19, 5  ;;  %s425_s21 = sshrl.u32 %s2283_s28, 3 }
 0x21d   : > { %s417_s29 = sadd.s32 %s844_s26, %s415_s20  ;;  %s426_s16 = sand.u32 7, %s2283_s28  }
 0x21e   : > { %s845_s25 = sshll.u32 %s425_s21, 5  ;;  %s418_s13 = scalar_lea.vmem [#allocation5], %s417_s29 }
 0x21f   : > { %s420_s6 = sshll.u32 %s418_s13, 4  ;;  %s428_s8 = sadd.s32 %s845_s25, %s426_s16  ;;  %s421_s6 = int_to_ptr.vmem [resolvable:$true] %s420_s6 }
 0x220   : > { %s846_s30 = sshll.u32 %s428_s8, 4  ;;  %p1383_p12 = pneg %p1382_p11 }
 0x221   : > { %p1387_p2 = por %p1386_p1, %p1385_p13 }
 0x223   : > { %p1388_p3 = pnand %p1387_p2, %p1383_p12 }
 0x225   : > { %1391 = shalt.err (!%p1388_p3)  }
 0x226   : > { %s1392_s7 = scalar_lea.vmem %s421_s6, 64  ;;  %p1399_p8 = scmp.lt.s32.totalorder %s421_s6, %s1573_s14 }
 0x227   : > { %p1393_p4 = scmp.ne.s32.totalorder %s421_s6, %s1392_s7  ;;  %p1400_p9 = scmp.lt.s32.totalorder %s1600_s9, %s1392_s7 }
 0x229   : > { %p1394_p5 = pnand %p1393_p4, %p1995_p0  ;;  %p1401_p10 = por %p1400_p9, %p1399_p8 }
 0x22b   : > { %p1395_p7 = pneg %p1394_p5 }
 0x22d   : > { %p1402_p11 = pnand %p1401_p10, %p1395_p7 }
 0x22f   : > { %1405 = shalt.err (!%p1402_p11)  }
 0x230   : > { %s2284_s22 = sld [smem:[#allocation51_spill]]  ;;  %s2149_s24 = scalar_lea.hbm %s2242_s1, %s846_s30 }
 0x231   : > { %s2285_s17 = sld [smem:[#allocation43_spill]]  ;;  %s1406_s13 = scalar_lea.hbm %s2149_s24, 64 }
 0x232   : > { %s2286_s11 = sld [smem:[#allocation48_spill]]  ;;  %p1407_p12 = scmp.ne.s32.totalorder %s2149_s24, %s1406_s13 }
 0x233   : > { %p1411_p2 = scmp.lt.s32.totalorder %s2149_s24, %s2242_s1  ;;  %p1412_p3 = scmp.lt.s32.totalorder %s1591_s5, %s1406_s13 }
 0x234   : > { %p1408_p13 = pnand %p1407_p12, %p1995_p0 }
 0x235   : > { %p1413_p4 = por %p1412_p3, %p1411_p2 }
 0x236   : > { %880 = dma.hbm_to_vmem [thread:$0]  (%p1995_p0), %s2121_s10, 64, %s421_s6, %s2284_s22, %s1551_s3, %s1551_s3, %s1552_s12 }
 0x237   : > { %s431_s19 = sshrl.u32 %s2285_s17, 3  ;;  %s432_s0 = sand.u32 7, %s2285_s17  }
 0x238   : > { %s847_s4 = sshll.u32 %s431_s19, 5  ;;  %s442_s26 = sshrl.u32 %s2286_s11, 3 }
 0x239   : > { %s434_s20 = sadd.s32 %s847_s4, %s432_s0  ;;  %s443_s21 = sand.u32 7, %s2286_s11  }
 0x23a   : > { %s435_s29 = scalar_lea.vmem [#allocation5], %s434_s20  ;;  %s848_s25 = sshll.u32 %s442_s26, 5 }
 0x23b   : > { %s437_s16 = sshll.u32 %s435_s29, 4  ;;  %s445_s10 = sadd.s32 %s848_s25, %s443_s21  ;;  %s438_s16 = int_to_ptr.vmem [resolvable:$true] %s437_s16 }
 0x23c   : > { %p1409_p1 = pneg %p1408_p13 }
 0x23e   : > { %p1414_p5 = pnand %p1413_p4, %p1409_p1 }
 0x240   : > { %1417 = shalt.err (!%p1414_p5)  }
 0x241   : > { %s1418_s30 = scalar_lea.vmem %s438_s16, 64  ;;  %p1425_p10 = scmp.lt.s32.totalorder %s438_s16, %s1573_s14 }
 0x242   : > { %p1419_p7 = scmp.ne.s32.totalorder %s438_s16, %s1418_s30  ;;  %p1426_p11 = scmp.lt.s32.totalorder %s1600_s9, %s1418_s30 }
 0x244   : > { %p1420_p8 = pnand %p1419_p7, %p1995_p0  ;;  %p1427_p12 = por %p1426_p11, %p1425_p10 }
 0x246   : > { %p1421_p9 = pneg %p1420_p8 }
 0x248   : > { %p1428_p13 = pnand %p1427_p12, %p1421_p9 }
 0x24a   : > { %1431 = shalt.err (!%p1428_p13)  }
 0x24b   : > { %s2287_s23 = sld [smem:[#allocation52_spill]]  ;;  %s849_s7 = sshll.u32 %s445_s10, 4 }
 0x24c   : > { %s2288_s27 = sld [smem:[#allocation44_spill]]  ;;  %s2179_s18 = scalar_lea.hbm %s2242_s1, %s849_s7 }
 0x24d   : > { %s2289_s15 = sld [smem:[#allocation49_spill]]  ;;  %p1437_p4 = scmp.lt.s32.totalorder %s2179_s18, %s2242_s1 }
 0x251   : > { %881 = dma.hbm_to_vmem [thread:$0]  (%p1995_p0), %s2149_s24, 64, %s438_s16, %s2287_s23, %s1551_s3, %s1551_s3, %s1552_s12 }
 0x252   : > { %s448_s22 = sshrl.u32 %s2288_s27, 3  ;;  %s449_s28 = sand.u32 7, %s2288_s27  }
 0x253   : > { %s850_s19 = sshll.u32 %s448_s22, 5  ;;  %s459_s0 = sshrl.u32 %s2289_s15, 3 }
 0x254   : > { %s451_s4 = sadd.s32 %s850_s19, %s449_s28  ;;  %s460_s20 = sand.u32 7, %s2289_s15  }
 0x255   : > { %s851_s26 = sshll.u32 %s459_s0, 5  ;;  %s452_s21 = scalar_lea.vmem [#allocation5], %s451_s4 }
 0x256   : > { %s454_s24 = sshll.u32 %s452_s21, 4  ;;  %s462_s29 = sadd.s32 %s851_s26, %s460_s20  ;;  %s455_s24 = int_to_ptr.vmem [resolvable:$true] %s454_s24 }
 0x257   : > { %s1432_s16 = scalar_lea.hbm %s2179_s18, 64 }
 0x258   : > { %p1433_p1 = scmp.ne.s32.totalorder %s2179_s18, %s1432_s16  ;;  %p1438_p5 = scmp.lt.s32.totalorder %s1591_s5, %s1432_s16 }
 0x25a   : > { %p1434_p2 = pnand %p1433_p1, %p1995_p0  ;;  %p1439_p7 = por %p1438_p5, %p1437_p4 }
 0x25c   : > { %p1435_p3 = pneg %p1434_p2 }
 0x25e   : > { %p1440_p8 = pnand %p1439_p7, %p1435_p3 }
 0x260   : > { %1443 = shalt.err (!%p1440_p8)  }
 0x261   : > { %s1444_s13 = scalar_lea.vmem %s455_s24, 64  ;;  %p1451_p12 = scmp.lt.s32.totalorder %s455_s24, %s1573_s14 }
 0x262   : > { %p1445_p9 = scmp.ne.s32.totalorder %s455_s24, %s1444_s13  ;;  %p1452_p13 = scmp.lt.s32.totalorder %s1600_s9, %s1444_s13 }
 0x264   : > { %p1446_p10 = pnand %p1445_p9, %p1995_p0  ;;  %p1453_p1 = por %p1452_p13, %p1451_p12 }
 0x266   : > { %p1447_p11 = pneg %p1446_p10 }
 0x268   : > { %p1454_p2 = pnand %p1453_p1, %p1447_p11 }
 0x26a   : > { %1457 = shalt.err (!%p1454_p2)  }
 0x26b   : > { %s2290_s6 = sld [smem:[#allocation53_spill]]  ;;  %s852_s23 = sshll.u32 %s462_s29, 4 }
 0x26c   : > { %s2291_s8 = sld [smem:[#allocation47_spill]]  ;;  %s464_s28 = scalar_lea.hbm %s2242_s1, %s852_s23 }
 0x26d   : > { %s2292_s30 = sld [smem:[#allocation41_spill]]  ;;  %s1458_s26 = scalar_lea.hbm %s464_s28, 64 }
 0x26e   : > { %p1459_p3 = scmp.ne.s32.totalorder %s464_s28, %s1458_s26  ;;  %p1463_p7 = scmp.lt.s32.totalorder %s464_s28, %s2242_s1 }
 0x26f   : > { %p1464_p8 = scmp.lt.s32.totalorder %s1591_s5, %s1458_s26 }
 0x270   : > { %p1460_p4 = pnand %p1459_p3, %p1995_p0 }
 0x271   : > { %882 = dma.hbm_to_vmem [thread:$0]  (%p1995_p0), %s2179_s18, 64, %s455_s24, %s2290_s6, %s1551_s3, %s1551_s3, %s1552_s12 }
 0x272   : > { %s465_s27 = sshrl.u32 %s2291_s8, 3  ;;  %s466_s15 = sand.u32 7, %s2291_s8  }
 0x273   : > { %s853_s7 = sshll.u32 %s465_s27, 5  ;;  %s2293_s4 = sshll.u32 %s2292_s30, 3 }
 0x274   : > { %s468_s22 = sadd.s32 %s853_s7, %s466_s15  ;;  %s475_s20 = sshra.s32 %s2293_s4, 3 }
 0x275   : > { %s469_s19 = scalar_lea.vmem [#allocation5], %s468_s22  ;;  %p1461_p5 = pneg %p1460_p4 }
 0x276   : > { %s471_s0 = sshll.u32 %s469_s19, 4  ;;  %p1465_p9 = por %p1464_p8, %p1463_p7  ;;  %s472_s0 = int_to_ptr.vmem [resolvable:$true] %s471_s0 }
 0x278   : > { %p1466_p10 = pnand %p1465_p9, %p1461_p5 }
 0x27a   : > { %1469 = shalt.err (!%p1466_p10)  }
 0x27b   : > { %s1470_s24 = scalar_lea.vmem %s472_s0, 64  ;;  %p1477_p1 = scmp.lt.s32.totalorder %s472_s0, %s1573_s14 }
 0x27c   : > { %p1471_p11 = scmp.ne.s32.totalorder %s472_s0, %s1470_s24  ;;  %p1478_p2 = scmp.lt.s32.totalorder %s1600_s9, %s1470_s24 }
 0x27e   : > { %p1472_p12 = pnand %p1471_p11, %p1995_p0  ;;  %p1479_p3 = por %p1478_p2, %p1477_p1 }
 0x280   : > { %p1473_p13 = pneg %p1472_p12 }
 0x282   : > { %p1480_p4 = pnand %p1479_p3, %p1473_p13 }
 0x284   : > { %1483 = shalt.err (!%p1480_p4)  }
 0x285   : > { %s2294_s29 = sld [smem:[#allocation54_spill]]  ;;  %s874_s16 = sshll.u32 %s475_s20, 5 }
 0x286   : > { %s479_s25 = scalar_lea.vmem [#allocation5], %s874_s16  ;;  %s255_s8 = sadd.s32 1, %s2292_s30  }
 0x287   : > { %p252_p5 = scmp.ge.s32.totalorder %s255_s8, 2  }
 0x288   :  { %p1490_p7 = scmp.lt.s32.totalorder (%p252_p5), %s1600_s9, %s1600_s9 }
 0x28a   :  { %p1491_p8 = por (%p252_p5), %p1490_p7, %p939_p6 }
 0x28b   : > { %883 = dma.hbm_to_vmem [thread:$0]  (%p1995_p0), %s464_s28, 64, %s472_s0, %s2294_s29, %s1551_s3, %s1551_s3, %s1552_s12 }
 0x28c   : > { %v480_v0 = vld [vmem:[%s479_s25] sm:$0xff]  ;;  %v481_v1 = vld [vmem:[%s479_s25 + $0x8] sm:$0xff]  ;;  %v482_v2 = vld [vmem:[%s479_s25 + $0x10] sm:$0xff]  ;;  %p1485_p0 = scmp.ne.s32.totalorder (%p252_p5), %s1573_s14, %s1600_s9 }
 0x28d   : > { %v484_v3 = vmul.f32 22.627417, %v480_v0  ;;  %v485_v4 = vmul.f32 22.627417, %v481_v1  ;;  %v486_v5 = vmul.f32 22.627417, %v482_v2 }
 0x28e   : > { %v483_v6 = vld [vmem:[%s479_s25 + $0x18] sm:$0xff]  ;;  %254 = sbr.rel (!%p252_p5) target bundleno = 365 (0x16d), region = 117  ;;  %p1492_p9 = pnand (%p252_p5), %p1491_p8, %p1485_p0 }
 0x28f   : > { %488 = vst [vmem:[%s479_s25] sm:$0xff] %v484_v3  ;;  %489 = vst [vmem:[%s479_s25 + $0x8] sm:$0xff] %v485_v4  ;;  %v487_v7 = vmul.f32 22.627417, %v483_v6 }
 0x290   : > { %490 = vst [vmem:[%s479_s25 + $0x10] sm:$0xff] %v486_v5 }
 0x291   : > { %491 = vst [vmem:[%s479_s25 + $0x18] sm:$0xff] %v487_v7 }
 0x293   :  { %1495 = shalt.err (!%p1492_p9)
}
 0x294   :  { %s1553_s2 = smov 512   ;;  %s1554_s3 = smov 32  }
 0x295   :  { %s2295_s13 = sld [smem:[#allocation55_spill]] }
 0x29b   :  { %503 = dma.vmem_to_hbm [thread:$0]  %s1573_s14, 1024, %s2295_s13, [#allocation6], %s1553_s2, %s1553_s2, %s1554_s3  }
 0x29c   :  { %1526 = dma.done.wait [#allocation6], 1024  }
 0x29d   :  { %1527 = vsyncadd [#allocation6], 4294966272 }
 0x29e   :  { %507 = vsyncpa [#allocation6], 1 }
 0x29f   :  { %508 = vsyncmov [#allocation2] }
 0x2a2   :  { %s509_s1 = vpop.sfrf %508 }
 0x2a3   :  { %p856_p10 = scmp.ne.s32.totalorder %s509_s1, 0 }
 0x2a5   :  { %513 = shalt.err (%p856_p10)  }
 0x2a6   :  { %515 = vsyncmov [#allocation2 + $0x1] }
 0x2a9   :  { %s516_s5 = vpop.sfrf %515 }
 0x2aa   :  { %p857_p11 = scmp.ne.s32.totalorder %s516_s5, 0 }
 0x2ac   :  { %520 = shalt.err (%p857_p11)  }
 0x2ad   :  { %522 = vsyncmov [#allocation2 + $0x2] }
 0x2b0   :  { %s523_s9 = vpop.sfrf %522 }
 0x2b1   :  { %p858_p6 = scmp.ne.s32.totalorder %s523_s9, 0 }
 0x2b3   :  { %527 = shalt.err (%p858_p6)  }
 0x2b4   :  { %529 = vsyncmov [#allocation2 + $0x3] }
 0x2b7   :  { %s530_s6 = vpop.sfrf %529 }
 0x2b8   :  { %p859_p12 = scmp.ne.s32.totalorder %s530_s6, 0 }
 0x2ba   :  { %534 = shalt.err (%p859_p12)  }
 0x2bb   :  { %536 = vsyncmov [#allocation2 + $0x4] }
 0x2be   :  { %s537_s14 = vpop.sfrf %536 }
 0x2bf   :  { %p860_p13 = scmp.ne.s32.totalorder %s537_s14, 0 }
 0x2c1   :  { %541 = shalt.err (%p860_p13)  }
 0x2c2   :  { %543 = vsyncmov [#allocation2 + $0x5] }
 0x2c5   :  { %s544_s8 = vpop.sfrf %543 }
 0x2c6   :  { %p861_p1 = scmp.ne.s32.totalorder %s544_s8, 0 }
 0x2c8   :  { %548 = shalt.err (%p861_p1)  }
 0x2c9   :  { %550 = vsyncmov [#allocation2 + $0x6] }
 0x2cc   :  { %s551_s30 = vpop.sfrf %550 }
 0x2cd   :  { %p862_p2 = scmp.ne.s32.totalorder %s551_s30, 0 }
 0x2cf   :  { %555 = shalt.err (%p862_p2)  }
 0x2d0   :  { %557 = vsyncmov [#allocation2 + $0x7] }
 0x2d3   :  { %s558_s23 = vpop.sfrf %557 }
 0x2d4   :  { %p863_p3 = scmp.ne.s32.totalorder %s558_s23, 0 }
 0x2d6   :  { %562 = shalt.err (%p863_p3)  }
 0x2d7   :  { %564 = vsyncmov [#allocation2 + $0x8] }
 0x2da   :  { %s565_s27 = vpop.sfrf %564 }
 0x2db   :  { %p864_p4 = scmp.ne.s32.totalorder %s565_s27, 0 }
 0x2dd   :  { %569 = shalt.err (%p864_p4)  }
 0x2de   :  { %571 = vsyncmov [#allocation2 + $0x9] }
 0x2e1   :  { %s572_s15 = vpop.sfrf %571 }
 0x2e2   :  { %p865_p5 = scmp.ne.s32.totalorder %s572_s15, 0 }
 0x2e4   :  { %576 = shalt.err (%p865_p5)  }
 0x2e5   :  { %578 = vsyncmov [#allocation2 + $0xa] }
 0x2e8   :  { %s579_s7 = vpop.sfrf %578 }
 0x2e9   :  { %p866_p0 = scmp.ne.s32.totalorder %s579_s7, 0 }
 0x2eb   :  { %583 = shalt.err (%p866_p0)  }
 0x2ec   :  { %585 = vsyncmov [#allocation2 + $0xb] }
 0x2ef   :  { %s586_s22 = vpop.sfrf %585 }
 0x2f0   :  { %p867_p7 = scmp.ne.s32.totalorder %s586_s22, 0 }
 0x2f2   :  { %590 = shalt.err (%p867_p7)  }
 0x2f3   :  { %592 = vsyncmov [#allocation2 + $0xc] }
 0x2f6   :  { %s593_s17 = vpop.sfrf %592 }
 0x2f7   :  { %p868_p8 = scmp.ne.s32.totalorder %s593_s17, 0 }
 0x2f9   :  { %597 = shalt.err (%p868_p8)  }
 0x2fa   :  { %599 = vsyncmov [#allocation2 + $0xd] }
 0x2fd   :  { %s600_s11 = vpop.sfrf %599 }
 0x2fe   :  { %p869_p9 = scmp.ne.s32.totalorder %s600_s11, 0 }
 0x300   :  { %604 = shalt.err (%p869_p9)  }
 0x301   :  { %606 = vsyncmov [#allocation2 + $0xe] }
 0x304   :  { %s607_s28 = vpop.sfrf %606 }
 0x305   :  { %p870_p10 = scmp.ne.s32.totalorder %s607_s28, 0 }
 0x307   :  { %611 = shalt.err (%p870_p10)  }
 0x308   :  { %613 = vsyncmov [#allocation2 + $0xf] }
 0x30b   :  { %s614_s19 = vpop.sfrf %613 }
 0x30c   :  { %p871_p11 = scmp.ne.s32.totalorder %s614_s19, 0 }
 0x30e   :  { %618 = shalt.err (%p871_p11)  }

</bundles_post_ra>
